<compile_context>
chip_gen: v7x
topology: tpu7x:2x2x1
jax: 0.10.0
libtpu: 0.0.40
codegen_flags: <defaults>
</compile_context>

<pallas_src>
import numpy as np
import jax
import jax.numpy as jnp
from jax.experimental import pallas as pl
from jax.experimental.pallas import tpu as pltpu

_EPS = 1e-7  # f32-scale guard for degenerate (all-zero padded) boxes.


def _sum_all(v):
    """Reduce a 2-D tile to (1, 1) with keepdims reductions (no rank-0 values)."""
    return jnp.sum(jnp.sum(v, axis=1, keepdims=True), axis=0, keepdims=True)


def _round_up(x, m):
    return ((int(x) + m - 1) // m) * m


def _stream_budget_bytes():
    """Per-grid-step mask-stream byte budget (src+tgt, single buffer)."""
    try:
        kind = jax.devices()[0].device_kind.lower()
    except Exception:
        kind = ""
    if "v5 lite" in kind or "v5e" in kind or "v5lite" in kind:
        return 3 << 20   # v5e: 16 MiB scoped-VMEM default, lower HBM bandwidth
    return 6 << 20       # v6e / v7x: 32 MiB scoped-VMEM default


def _pick_hw_tile(n_rows, hw, bytes_per_elem, budget_bytes):
    """Largest HW tile that is a multiple of 128, divides hw, and keeps one grid step's
    mask-stream traffic (src+tgt, single buffer) under budget_bytes. Small or
    non-128-aligned arrays use a single full block."""
    if hw % 128 != 0 or n_rows * hw * bytes_per_elem <= budget_bytes:
        return hw
    best = 128
    t = 128
    while t <= hw:
        if hw % t == 0 and n_rows * t * bytes_per_elem <= budget_bytes:
            best = t
        t += 128
    return best


def fused_set_criterion_losses(counts, logits_t, tgt_cls, boxes8, src_masks, tgt_masks, *,
                               num_classes, eos_coef, w_ce, w_bbox, w_giou,
                               use_labels, use_boxes, use_masks):
    """One pallas_call computing [loss_ce, loss_bbox, loss_giou, loss_mask, loss_dice, total].

    counts   : (3,) int32  [n_matched_boxes, n_valid_mask_rows, num_boxes]  (scalar prefetch)
    logits_t : (C+1, B*Q) float     tgt_cls : (1, B*Q) int32
    boxes8   : (8, NB_pad) float    src_masks : (NM_pad, HW) bf16   tgt_masks : (NM_pad, HW) int8
    Returns a (1, 128) float32 slab; lanes 0..4 hold the losses, lane 5 the total.
    """
    C1, NQ = logits_t.shape
    NB = boxes8.shape[1]
    NM, HW = src_masks.shape
    bytes_per_elem = src_masks.dtype.itemsize + tgt_masks.dtype.itemsize
    tile_hw = _pick_hw_tile(NM, HW, bytes_per_elem, _stream_budget_bytes())
    grid = (max(1, HW // tile_hw),)
    inv_hw = 1.0 / float(HW)

    def kernel(cnt_ref, logits_ref, tgt_ref, box_ref, sm_ref, tm_ref, out_ref,
               head_ref, facc_ref, dprod_ref, dpsum_ref, dtsum_ref):
        step = pl.program_id(0)
        is_first = step == 0
        is_last = step == pl.num_programs(0) - 1

        # ---- step 0: init accumulators + CE / box losses (hidden under the mask stream) ----
        @pl.when(is_first)
        def _head():
            facc_ref[...] = jnp.zeros_like(facc_ref)
            dprod_ref[...] = jnp.zeros_like(dprod_ref)
            dpsum_ref[...] = jnp.zeros_like(dpsum_ref)
            dtsum_ref[...] = jnp.zeros_like(dtsum_ref)

            num_boxes = jnp.maximum(cnt_ref[2].astype(jnp.float32), 1.0)
            inv_nb = 1.0 / num_boxes                       # exact: runs once per call

            zero = jnp.zeros((1, 1), jnp.float32)
            loss_ce = zero
            loss_bbox = zero
            loss_giou = zero

            if use_labels:
                xl = logits_ref[...].astype(jnp.float32)    # (C+1, NQ), queries on lanes
                tc = tgt_ref[...]                           # (1, NQ) int32
                m = jnp.max(xl, axis=0, keepdims=True)
                lse = m + jnp.log(jnp.sum(jnp.exp(xl - m), axis=0, keepdims=True))
                cls_idx = jax.lax.broadcasted_iota(jnp.int32, xl.shape, 0)
                sel = (cls_idx == tc).astype(jnp.float32)   # in-kernel "one-hot"
                tgt_logit = jnp.sum(sel * xl, axis=0, keepdims=True)
                nll = lse - tgt_logit                       # (1, NQ)
                sw = jnp.where(tc == num_classes, eos_coef, 1.0).astype(jnp.float32)
                loss_ce = w_ce * _sum_all(sw * nll) / _sum_all(sw)   # weighted-mean CE

            if use_boxes:
                b = box_ref[...].astype(jnp.float32)        # (8, NB)
                lane_b = jax.lax.broadcasted_iota(jnp.int32, (1, NB), 1)
                valid = (lane_b < cnt_ref[0]).astype(jnp.float32)
                scx, scy, sww, shh = b[0:1], b[1:2], b[2:3], b[3:4]
                tcx, tcy, tww, thh = b[4:5], b[5:6], b[6:7], b[7:8]
                l1 = (jnp.abs(scx - tcx) + jnp.abs(scy - tcy)
                      + jnp.abs(sww - tww) + jnp.abs(shh - thh))
                loss_bbox = (w_bbox * inv_nb) * _sum_all(valid * l1)

                sx0, sy0 = scx - 0.5 * sww, scy - 0.5 * shh
                sx1, sy1 = scx + 0.5 * sww, scy + 0.5 * shh
                tx0, ty0 = tcx - 0.5 * tww, tcy - 0.5 * thh
                tx1, ty1 = tcx + 0.5 * tww, tcy + 0.5 * thh
                area_s = (sx1 - sx0) * (sy1 - sy0)
                area_t = (tx1 - tx0) * (ty1 - ty0)
                ix0 = jnp.maximum(sx0, tx0); iy0 = jnp.maximum(sy0, ty0)
                ix1 = jnp.minimum(sx1, tx1); iy1 = jnp.minimum(sy1, ty1)
                inter = jnp.maximum(ix1 - ix0, 0.0) * jnp.maximum(iy1 - iy0, 0.0)
                union = area_s + area_t - inter
                iou = inter / (union + _EPS)                # exact: once per call
                ex0 = jnp.minimum(sx0, tx0); ey0 = jnp.minimum(sy0, ty0)
                ex1 = jnp.maximum(sx1, tx1); ey1 = jnp.maximum(sy1, ty1)
                earea = jnp.maximum(ex1 - ex0, 0.0) * jnp.maximum(ey1 - ey0, 0.0)
                giou = iou - (earea - union) / (earea + _EPS)
                loss_giou = (w_giou * inv_nb) * _sum_all(valid * (1.0 - giou))

            lane = jax.lax.broadcasted_iota(jnp.int32, (1, 128), 1)
            head = jnp.where(lane == 0, loss_ce, jnp.zeros((1, 128), jnp.float32))
            head = jnp.where(lane == 1, loss_bbox, head)
            head = jnp.where(lane == 2, loss_giou, head)
            head = jnp.where(lane == 5, loss_ce + loss_bbox + loss_giou, head)
            head_ref[...] = head

        # ---- every step: streamed focal / dice partials over one HW tile ----
        if use_masks:
            x = sm_ref[...].astype(jnp.float32)             # (NM, tile_hw) logits (bf16 in)
            t = tm_ref[...].astype(jnp.float32)             # (NM, tile_hw) binary (int8 in)
            e = jnp.exp(-jnp.abs(x))                        # single exp per element
            one_pe = 1.0 + e
            inv_1pe = pl.reciprocal(one_pe, approx=True)    # only per-element recip is approx
            p = jnp.where(x >= 0.0, 1.0, e) * inv_1pe       # sigmoid(x)
            ce = jnp.maximum(x, 0.0) + jnp.log(one_pe) - x * t   # stable BCE-with-logits
            pt = p * t                                      # reused for dice numerator
            one_m_pt = p + t - 2.0 * pt                     # 1 - p_t
            alpha_t = 0.75 - 0.5 * t                        # 0.25*t + 0.75*(1-t)
            focal = alpha_t * ce * one_m_pt * one_m_pt
            facc_ref[...] += jnp.sum(focal, axis=1, keepdims=True)   # (NM, 1) per-row
            dprod_ref[...] += jnp.sum(pt, axis=1, keepdims=True)
            dpsum_ref[...] += jnp.sum(p, axis=1, keepdims=True)
            dtsum_ref[...] += jnp.sum(t, axis=1, keepdims=True)

        # ---- last step: add mask losses and emit the lane-dense scalar slab ----
        @pl.when(is_last)
        def _tail():
            out = head_ref[...]
            if use_masks:
                num_boxes = jnp.maximum(cnt_ref[2].astype(jnp.float32), 1.0)
                inv_nb = 1.0 / num_boxes
                row = jax.lax.broadcasted_iota(jnp.int32, (NM, 1), 0)
                rvalid = (row < cnt_ref[1]).astype(jnp.float32)   # mask out padded rows
                loss_mask = _sum_all(rvalid * facc_ref[...]) * (inv_hw * inv_nb)
                dice_row = 1.0 - (2.0 * dprod_ref[...] + 1.0) / (
                    dpsum_ref[...] + dtsum_ref[...] + 1.0)        # exact: once per call
                loss_dice = _sum_all(rvalid * dice_row) * inv_nb
                lane = jax.lax.broadcasted_iota(jnp.int32, (1, 128), 1)
                zero128 = jnp.zeros((1, 128), jnp.float32)
                out = out + jnp.where(lane == 3, loss_mask, zero128)
                out = out + jnp.where(lane == 4, loss_dice, zero128)
                out = out + jnp.where(lane == 5, loss_mask + loss_dice, zero128)
            out_ref[...] = out

    def build(single_buffer_residents):
        res_kwargs = {}
        if single_buffer_residents:
            # Grid-invariant inputs: the second pipeline buffer is dead VMEM.
            res_kwargs = dict(pipeline_mode=pl.Buffered(1))
        in_specs = [
            pl.BlockSpec((C1, NQ), lambda h, cnt: (0, 0), **res_kwargs),   # resident
            pl.BlockSpec((1, NQ), lambda h, cnt: (0, 0), **res_kwargs),    # resident
            pl.BlockSpec((8, NB), lambda h, cnt: (0, 0), **res_kwargs),    # resident
            pl.BlockSpec((NM, tile_hw), lambda h, cnt: (0, h)),            # streamed
            pl.BlockSpec((NM, tile_hw), lambda h, cnt: (0, h)),            # streamed
        ]
        return pl.pallas_call(
            kernel,
            out_shape=jax.ShapeDtypeStruct((1, 128), jnp.float32),
            grid_spec=pltpu.PrefetchScalarGridSpec(
                num_scalar_prefetch=1,
                grid=grid,
                in_specs=in_specs,
                out_specs=pl.BlockSpec((1, 128), lambda h, cnt: (0, 0)),
                scratch_shapes=[
                    pltpu.VMEM((1, 128), jnp.float32),   # step-0 CE/box scalar slab
                    pltpu.VMEM((NM, 1), jnp.float32),    # per-row focal sums
                    pltpu.VMEM((NM, 1), jnp.float32),    # per-row sum(p*t)
                    pltpu.VMEM((NM, 1), jnp.float32),    # per-row sum(p)
                    pltpu.VMEM((NM, 1), jnp.float32),    # per-row sum(t)
                ],
            ),
            compiler_params=pltpu.CompilerParams(
                dimension_semantics=("arbitrary",),      # HW axis is an accumulation axis
                vmem_limit_bytes=48 * 1024 * 1024,       # < v7x 64 MiB physical, > defaults
            ),
        )

    args = (counts, logits_t, tgt_cls, boxes8, src_masks, tgt_masks)
    try:
        return build(True)(*args)
    except Exception:
        # Fallback if single-buffered residents are rejected by this Pallas version.
        return build(False)(*args)


# ----------------------------- SetCriterion -----------------------------

def identity_matcher(outputs, targets):
    # TODO(synk): Hungarian matcher (scipy linear_sum_assignment) replaced by a
    # deterministic identity assignment.
    return [(np.arange(len(t['labels'])), np.arange(len(t['labels']))) for t in targets]


class SetCriterion:
    def __init__(self, num_classes, matcher, weight_dict, eos_coef, losses, max_matches=None):
        self.num_classes = int(num_classes)
        self.matcher = matcher
        self.weight_dict = weight_dict
        self.eos_coef = float(eos_coef)
        self.losses_task = losses
        # Static cap on matched boxes/masks -> stable pallas_call signature (no recompiles).
        self.max_matches = max_matches

    def forward(self, outputs, targets):
        indices = self.matcher(outputs, targets)
        # TODO(synk): num_boxes has no cross-device all_reduce (single-device only).
        num_boxes = int(max(sum(len(t['labels']) for t in targets), 1))

        use_labels = 'labels' in self.losses_task
        use_boxes = 'boxes' in self.losses_task
        use_masks = 'masks' in self.losses_task
        # TODO(synk): 'cardinality' and class_error only produce '*_error' keys, which
        # the reference excludes from losses_sum, so they are omitted here.

        src_idx = [np.asarray(src) for (src, _) in indices]
        tgt_idx = [np.asarray(tgt) for (_, tgt) in indices]
        n_matched = int(sum(len(s) for s in src_idx))

        cap = self.max_matches if self.max_matches is not None else n_matched
        cap = max(int(cap), n_matched, 1)
        NB_pad = _round_up(cap, 128)
        NM_pad = _round_up(cap, 8)

        # ---- classification inputs: (C+1, B*Q) logits + int32 targets (no one-hot) ----
        if use_labels:
            logits = outputs['pred_logits']                      # (B, Q, C+1)
            B, Q, C1 = logits.shape
            NQ = B * Q
            target_classes = np.full((B, Q), self.num_classes, dtype=np.int32)
            for b in range(B):
                lbls = np.asarray(targets[b]['labels'])
                if len(src_idx[b]):
                    target_classes[b, src_idx[b]] = lbls[tgt_idx[b]]
            logits_t = jnp.transpose(logits.reshape(NQ, C1))     # queries on the lane axis
            tgt_cls = jnp.asarray(target_classes.reshape(1, NQ), dtype=jnp.int32)
        else:
            logits_t = jnp.zeros((2, 128), jnp.float32)
            tgt_cls = jnp.zeros((1, 128), jnp.int32)

        # ---- box inputs: (8, NB_pad) lane-dense stacked tile (src rows 0-3, tgt 4-7) ----
        if use_boxes:
            boxes8 = jnp.zeros((8, NB_pad), jnp.float32)
            if n_matched > 0:
                src_boxes = jnp.concatenate(
                    [outputs['pred_boxes'][b][jnp.asarray(si)]
                     for b, si in enumerate(src_idx) if len(si)], axis=0)
                tgt_boxes = jnp.concatenate(
                    [targets[b]['boxes'][jnp.asarray(ti)]
                     for b, ti in enumerate(tgt_idx) if len(ti)], axis=0)
                boxes8 = boxes8.at[0:4, :n_matched].set(
                    jnp.transpose(src_boxes).astype(jnp.float32))
                boxes8 = boxes8.at[4:8, :n_matched].set(
                    jnp.transpose(tgt_boxes).astype(jnp.float32))
        else:
            boxes8 = jnp.zeros((8, 128), jnp.float32)

        # ---- mask inputs: (NM_pad, H*W), pred logits as bf16, binary targets as int8 ----
        # (Dtype compression halves/quarters HBM traffic of the streamed loop; ideally the
        # producer emits these dtypes directly.)
        if use_masks:
            Hm, Wm = outputs['pred_masks'].shape[-2:]
            HW = Hm * Wm
            if n_matched > 0:
                src_m = jnp.concatenate(
                    [outputs['pred_masks'][b][jnp.asarray(si)]
                     for b, si in enumerate(src_idx) if len(si)], axis=0).reshape(n_matched, HW)
                tgt_m = jnp.concatenate(
                    [targets[b]['masks'][jnp.asarray(ti)]
                     for b, ti in enumerate(tgt_idx) if len(ti)], axis=0).reshape(n_matched, HW)
            else:
                src_m = jnp.zeros((0, HW), jnp.float32)
                tgt_m = jnp.zeros((0, HW), jnp.float32)
            # TODO(synk): bilinear resize of pred masks to the target resolution is identity
            # here because pred and target masks already share (H, W).
            pad_rows = NM_pad - n_matched
            src_masks = jnp.pad(src_m.astype(jnp.bfloat16), ((0, pad_rows), (0, 0)))
            tgt_masks = jnp.pad(tgt_m.astype(jnp.int8), ((0, pad_rows), (0, 0)))
        else:
            src_masks = jnp.zeros((8, 128), jnp.bfloat16)
            tgt_masks = jnp.zeros((8, 128), jnp.int8)

        # ---- SMEM scalars: counts vary per step without changing the compiled kernel ----
        n_mask_rows = n_matched if use_masks else 0
        counts = jnp.asarray([n_matched, n_mask_rows, num_boxes], dtype=jnp.int32)

        # TODO(synk): on v7x the mask stream could additionally be split over a 2-D
        # (row-block, HW-tile) grid with dimension_semantics=("parallel","arbitrary") to use
        # both TensorCores; kept 1-D here (single-TC v5e/v6e and tiny demo shapes).
        res = fused_set_criterion_losses(
            counts, logits_t, tgt_cls, boxes8, src_masks, tgt_masks,
            num_classes=self.num_classes, eos_coef=self.eos_coef,
            w_ce=float(self.weight_dict.get('loss_ce', 1.0)),
            w_bbox=float(self.weight_dict.get('loss_bbox', 1.0)),
            w_giou=float(self.weight_dict.get('loss_giou', 1.0)),
            use_labels=use_labels,
            use_boxes=use_boxes,
            use_masks=use_masks,
        )
        # res[0, :6] = [loss_ce, loss_bbox, loss_giou, loss_mask, loss_dice, losses_sum]
        # TODO(synk): aux_outputs branch omitted (synthetic outputs contain no aux_outputs).
        return res[0, 5]


# ----------------------------- main -----------------------------

if __name__ == "__main__":
    key = jax.random.PRNGKey(0)
    B, Q, num_classes, H, W = 2, 8, 4, 16, 16
    n_tgt = [3, 3]

    k1, k2, k3, k4, k5 = jax.random.split(key, 5)
    pred_logits = jax.random.normal(k1, (B, Q, num_classes + 1), jnp.float32)
    cxcy = jax.random.uniform(k2, (B, Q, 2), minval=0.3, maxval=0.7)
    wh = jax.random.uniform(k3, (B, Q, 2), minval=0.1, maxval=0.4)
    pred_boxes = jnp.concatenate([cxcy, wh], axis=-1)
    pred_masks = jax.random.normal(k4, (B, Q, H, W), jnp.float32)

    targets = []
    tkeys = jax.random.split(k5, B)
    for b in range(B):
        kb1, kb2, kb3, kb4 = jax.random.split(tkeys[b], 4)
        n = n_tgt[b]
        labels = jax.random.randint(kb1, (n,), 0, num_classes)
        tcxcy = jax.random.uniform(kb2, (n, 2), minval=0.3, maxval=0.7)
        twh = jax.random.uniform(kb3, (n, 2), minval=0.1, maxval=0.4)
        boxes = jnp.concatenate([tcxcy, twh], axis=-1)
        masks = (jax.random.uniform(kb4, (n, H, W)) > 0.5).astype(jnp.float32)
        targets.append({'labels': labels, 'boxes': boxes, 'masks': masks})

    weight_dict = {'loss_ce': 1.0, 'loss_bbox': 5.0, 'loss_giou': 2.0}
    criterion = SetCriterion(num_classes, identity_matcher, weight_dict,
                             eos_coef=0.1, losses=['labels', 'boxes', 'masks'],
                             max_matches=8)

    outputs = {'pred_logits': pred_logits, 'pred_boxes': pred_boxes, 'pred_masks': pred_masks}
    total = criterion.forward(outputs, targets)
    total = jax.block_until_ready(total)
    assert np.isfinite(float(total))
    print("KERNEL_OK")
</pallas_src>

<mosaic_0001>
module attributes {stable_mosaic.version = 11 : i64} {
  func.func @kernel(%arg0: i32, %arg1: memref<3xi32, #tpu.memory_space<smem>>, %arg2: memref<5x16xf32, #tpu.memory_space<vmem>>, %arg3: memref<1x16xi32, #tpu.memory_space<vmem>>, %arg4: memref<8x128xf32, #tpu.memory_space<vmem>>, %arg5: memref<8x256xbf16, #tpu.memory_space<vmem>>, %arg6: memref<8x256xi8, #tpu.memory_space<vmem>>, %arg7: memref<1x128xf32, #tpu.memory_space<vmem>>, %arg8: memref<1x128xf32, #tpu.memory_space<vmem>>, %arg9: memref<8x1xf32, #tpu.memory_space<vmem>>, %arg10: memref<8x1xf32, #tpu.memory_space<vmem>>, %arg11: memref<8x1xf32, #tpu.memory_space<vmem>>, %arg12: memref<8x1xf32, #tpu.memory_space<vmem>>) attributes {dimension_semantics = [#tpu.dimension_semantics<arbitrary>], iteration_bounds = array<i64: 1>, scalar_prefetch = 1 : i64, scratch_operands = 5 : i64, tpu.core_type = #tpu.core_type<tc>, window_params = [{pipeline_mode = #tpu.pipeline_mode<synchronous>, transform_indices = @transform_0, window_bounds = array<i64: 5, 16>}, {pipeline_mode = #tpu.pipeline_mode<synchronous>, transform_indices = @transform_1, window_bounds = array<i64: 1, 16>}, {pipeline_mode = #tpu.pipeline_mode<synchronous>, transform_indices = @transform_2, window_bounds = array<i64: 8, 128>}, {transform_indices = @transform_3, window_bounds = array<i64: 8, 256>}, {transform_indices = @transform_4, window_bounds = array<i64: 8, 256>}, {pipeline_mode = #tpu.pipeline_mode<synchronous>, transform_indices = @transform_5, window_bounds = array<i64: 1, 128>}]} {
    %c0_i32 = arith.constant 0 : i32
    %0 = arith.cmpi eq, %arg0, %c0_i32 : i32
    %c0_i32_0 = arith.constant 0 : i32
    %1 = arith.cmpi eq, %arg0, %c0_i32_0 : i32
    %2 = arith.extui %0 : i1 to i32
    %c0_i32_1 = arith.constant 0 : i32
    %3 = arith.cmpi ne, %2, %c0_i32_1 : i32
    scf.if %3 {
      %cst_33 = arith.constant 0.000000e+00 : f32
      %60 = vector.broadcast %cst_33 : f32 to vector<8x1xf32>
      %c0_34 = arith.constant 0 : index
      %c0_35 = arith.constant 0 : index
      %61 = vector.load %arg9[%c0_34, %c0_35] : memref<8x1xf32, #tpu.memory_space<vmem>>, vector<8x1xf32>
      tpu.vector_store %arg9[%c0_34, %c0_35], %60 {strides = array<i32>} : memref<8x1xf32, #tpu.memory_space<vmem>>, vector<8x1xf32>,
      %cst_36 = arith.constant 0.000000e+00 : f32
      %62 = vector.broadcast %cst_36 : f32 to vector<8x1xf32>
      %c0_37 = arith.constant 0 : index
      %c0_38 = arith.constant 0 : index
      %63 = vector.load %arg10[%c0_37, %c0_38] : memref<8x1xf32, #tpu.memory_space<vmem>>, vector<8x1xf32>
      tpu.vector_store %arg10[%c0_37, %c0_38], %62 {strides = array<i32>} : memref<8x1xf32, #tpu.memory_space<vmem>>, vector<8x1xf32>,
      %cst_39 = arith.constant 0.000000e+00 : f32
      %64 = vector.broadcast %cst_39 : f32 to vector<8x1xf32>
      %c0_40 = arith.constant 0 : index
      %c0_41 = arith.constant 0 : index
      %65 = vector.load %arg11[%c0_40, %c0_41] : memref<8x1xf32, #tpu.memory_space<vmem>>, vector<8x1xf32>
      tpu.vector_store %arg11[%c0_40, %c0_41], %64 {strides = array<i32>} : memref<8x1xf32, #tpu.memory_space<vmem>>, vector<8x1xf32>,
      %cst_42 = arith.constant 0.000000e+00 : f32
      %66 = vector.broadcast %cst_42 : f32 to vector<8x1xf32>
      %c0_43 = arith.constant 0 : index
      %c0_44 = arith.constant 0 : index
      %67 = vector.load %arg12[%c0_43, %c0_44] : memref<8x1xf32, #tpu.memory_space<vmem>>, vector<8x1xf32>
      tpu.vector_store %arg12[%c0_43, %c0_44], %66 {strides = array<i32>} : memref<8x1xf32, #tpu.memory_space<vmem>>, vector<8x1xf32>,
      %c2 = arith.constant 2 : index
      %68 = memref.load %arg1[%c2] : memref<3xi32, #tpu.memory_space<smem>>
      %69 = arith.sitofp %68 : i32 to f32
      %cst_45 = arith.constant 1.000000e+00 : f32
      %70 = arith.maximumf %69, %cst_45 : f32
      %cst_46 = arith.constant 1.000000e+00 : f32
      %71 = arith.divf %cst_46, %70 : f32
      %c0_47 = arith.constant 0 : index
      %c0_48 = arith.constant 0 : index
      %72 = vector.load %arg2[%c0_47, %c0_48] : memref<5x16xf32, #tpu.memory_space<vmem>>, vector<5x16xf32>
      %c0_49 = arith.constant 0 : index
      %c0_50 = arith.constant 0 : index
      %73 = vector.load %arg3[%c0_49, %c0_50] : memref<1x16xi32, #tpu.memory_space<vmem>>, vector<1x16xi32>
      %cst_51 = arith.constant dense<0xFF800000> : vector<16xf32>
      %74 = vector.multi_reduction <maximumf>, %72, %cst_51 [0] : vector<5x16xf32> to vector<16xf32>
      %75 = vector.shape_cast %74 : vector<16xf32> to vector<1x16xf32>
      %76 = vector.broadcast %75 : vector<1x16xf32> to vector<5x16xf32>
      %77 = arith.subf %72, %76 : vector<5x16xf32>
      %78 = math.exp %77 : vector<5x16xf32>
      %cst_52 = arith.constant dense<0.000000e+00> : vector<16xf32>
      %79 = vector.multi_reduction <add>, %78, %cst_52 [0] : vector<5x16xf32> to vector<16xf32>
      %80 = vector.shape_cast %79 : vector<16xf32> to vector<1x16xf32>
      %81 = math.log %80 : vector<1x16xf32>
      %82 = arith.addf %75, %81 : vector<1x16xf32>
      %83 = tpu.iota {dimensions = array<i32: 0>} : vector<5x16xi32>
      %84 = vector.broadcast %73 : vector<1x16xi32> to vector<5x16xi32>
      %85 = arith.cmpi eq, %83, %84 : vector<5x16xi32>
      %86 = arith.extui %85 : vector<5x16xi1> to vector<5x16xi32>
      %87 = arith.sitofp %86 : vector<5x16xi32> to vector<5x16xf32>
      %88 = arith.mulf %87, %72 : vector<5x16xf32>
      %cst_53 = arith.constant dense<0.000000e+00> : vector<16xf32>
      %89 = vector.multi_reduction <add>, %88, %cst_53 [0] : vector<5x16xf32> to vector<16xf32>
      %90 = vector.shape_cast %89 : vector<16xf32> to vector<1x16xf32>
      %91 = arith.subf %82, %90 : vector<1x16xf32>
      %c4_i32 = arith.constant 4 : i32
      %92 = vector.broadcast %c4_i32 : i32 to vector<1x16xi32>
      %93 = arith.cmpi eq, %73, %92 : vector<1x16xi32>
      %cst_54 = arith.constant 1.000000e-01 : f32
      %cst_55 = arith.constant 1.000000e+00 : f32
      %94 = vector.broadcast %cst_54 : f32 to vector<1x16xf32>
      %95 = vector.broadcast %cst_55 : f32 to vector<1x16xf32>
      %96 = arith.select %93, %94, %95 : vector<1x16xi1>, vector<1x16xf32>
      %97 = arith.mulf %96, %91 : vector<1x16xf32>
      %cst_56 = arith.constant dense<0.000000e+00> : vector<1xf32>
      %98 = vector.multi_reduction <add>, %97, %cst_56 [1] : vector<1x16xf32> to vector<1xf32>
      %99 = vector.shape_cast %98 : vector<1xf32> to vector<1x1xf32>
      %cst_57 = arith.constant dense<0.000000e+00> : vector<1xf32>
      %100 = vector.multi_reduction <add>, %99, %cst_57 [0] : vector<1x1xf32> to vector<1xf32>
      %101 = vector.shape_cast %100 : vector<1xf32> to vector<1x1xf32>
      %cst_58 = arith.constant 1.000000e+00 : f32
      %102 = vector.broadcast %cst_58 : f32 to vector<1x1xf32>
      %103 = arith.mulf %102, %101 : vector<1x1xf32>
      %cst_59 = arith.constant dense<0.000000e+00> : vector<1xf32>
      %104 = vector.multi_reduction <add>, %96, %cst_59 [1] : vector<1x16xf32> to vector<1xf32>
      %105 = vector.shape_cast %104 : vector<1xf32> to vector<1x1xf32>
      %cst_60 = arith.constant dense<0.000000e+00> : vector<1xf32>
      %106 = vector.multi_reduction <add>, %105, %cst_60 [0] : vector<1x1xf32> to vector<1xf32>
      %107 = vector.shape_cast %106 : vector<1xf32> to vector<1x1xf32>
      %108 = arith.divf %103, %107 : vector<1x1xf32>
      %c0_61 = arith.constant 0 : index
      %c0_62 = arith.constant 0 : index
      %109 = vector.load %arg4[%c0_61, %c0_62] : memref<8x128xf32, #tpu.memory_space<vmem>>, vector<8x128xf32>
      %110 = tpu.iota {dimensions = array<i32: 1>} : vector<1x128xi32>
      %c0_63 = arith.constant 0 : index
      %111 = memref.load %arg1[%c0_63] : memref<3xi32, #tpu.memory_space<smem>>
      %112 = vector.broadcast %111 : i32 to vector<1x128xi32>
      %113 = arith.cmpi slt, %110, %112 : vector<1x128xi32>
      %114 = arith.extui %113 : vector<1x128xi1> to vector<1x128xi32>
      %115 = arith.sitofp %114 : vector<1x128xi32> to vector<1x128xf32>
      %116 = vector.extract_strided_slice %109 {offsets = [0, 0], sizes = [1, 128], strides = [1, 1]} : vector<8x128xf32> to vector<1x128xf32>
      %117 = vector.extract_strided_slice %109 {offsets = [1, 0], sizes = [1, 128], strides = [1, 1]} : vector<8x128xf32> to vector<1x128xf32>
      %118 = vector.extract_strided_slice %109 {offsets = [2, 0], sizes = [1, 128], strides = [1, 1]} : vector<8x128xf32> to vector<1x128xf32>
      %119 = vector.extract_strided_slice %109 {offsets = [3, 0], sizes = [1, 128], strides = [1, 1]} : vector<8x128xf32> to vector<1x128xf32>
      %120 = vector.extract_strided_slice %109 {offsets = [4, 0], sizes = [1, 128], strides = [1, 1]} : vector<8x128xf32> to vector<1x128xf32>
      %121 = vector.extract_strided_slice %109 {offsets = [5, 0], sizes = [1, 128], strides = [1, 1]} : vector<8x128xf32> to vector<1x128xf32>
      %122 = vector.extract_strided_slice %109 {offsets = [6, 0], sizes = [1, 128], strides = [1, 1]} : vector<8x128xf32> to vector<1x128xf32>
      %123 = vector.extract_strided_slice %109 {offsets = [7, 0], sizes = [1, 128], strides = [1, 1]} : vector<8x128xf32> to vector<1x128xf32>
      %124 = arith.subf %116, %120 : vector<1x128xf32>
      %125 = math.absf %124 : vector<1x128xf32>
      %126 = arith.subf %117, %121 : vector<1x128xf32>
      %127 = math.absf %126 : vector<1x128xf32>
      %128 = arith.addf %125, %127 : vector<1x128xf32>
      %129 = arith.subf %118, %122 : vector<1x128xf32>
      %130 = math.absf %129 : vector<1x128xf32>
      %131 = arith.addf %128, %130 : vector<1x128xf32>
      %132 = arith.subf %119, %123 : vector<1x128xf32>
      %133 = math.absf %132 : vector<1x128xf32>
      %134 = arith.addf %131, %133 : vector<1x128xf32>
      %cst_64 = arith.constant 5.000000e+00 : f32
      %135 = arith.mulf %cst_64, %71 : f32
      %136 = arith.mulf %115, %134 : vector<1x128xf32>
      %cst_65 = arith.constant dense<0.000000e+00> : vector<1xf32>
      %137 = vector.multi_reduction <add>, %136, %cst_65 [1] : vector<1x128xf32> to vector<1xf32>
      %138 = vector.shape_cast %137 : vector<1xf32> to vector<1x1xf32>
      %cst_66 = arith.constant dense<0.000000e+00> : vector<1xf32>
      %139 = vector.multi_reduction <add>, %138, %cst_66 [0] : vector<1x1xf32> to vector<1xf32>
      %140 = vector.shape_cast %139 : vector<1xf32> to vector<1x1xf32>
      %141 = vector.broadcast %135 : f32 to vector<1x1xf32>
      %142 = arith.mulf %141, %140 : vector<1x1xf32>
      %cst_67 = arith.constant 5.000000e-01 : f32
      %143 = vector.broadcast %cst_67 : f32 to vector<1x128xf32>
      %144 = arith.mulf %143, %118 : vector<1x128xf32>
      %145 = arith.subf %116, %144 : vector<1x128xf32>
      %cst_68 = arith.constant 5.000000e-01 : f32
      %146 = vector.broadcast %cst_68 : f32 to vector<1x128xf32>
      %147 = arith.mulf %146, %119 : vector<1x128xf32>
      %148 = arith.subf %117, %147 : vector<1x128xf32>
      %cst_69 = arith.constant 5.000000e-01 : f32
      %149 = vector.broadcast %cst_69 : f32 to vector<1x128xf32>
      %150 = arith.mulf %149, %118 : vector<1x128xf32>
      %151 = arith.addf %116, %150 : vector<1x128xf32>
      %cst_70 = arith.constant 5.000000e-01 : f32
      %152 = vector.broadcast %cst_70 : f32 to vector<1x128xf32>
      %153 = arith.mulf %152, %119 : vector<1x128xf32>
      %154 = arith.addf %117, %153 : vector<1x128xf32>
      %cst_71 = arith.constant 5.000000e-01 : f32
      %155 = vector.broadcast %cst_71 : f32 to vector<1x128xf32>
      %156 = arith.mulf %155, %122 : vector<1x128xf32>
      %157 = arith.subf %120, %156 : vector<1x128xf32>
      %cst_72 = arith.constant 5.000000e-01 : f32
      %158 = vector.broadcast %cst_72 : f32 to vector<1x128xf32>
      %159 = arith.mulf %158, %123 : vector<1x128xf32>
      %160 = arith.subf %121, %159 : vector<1x128xf32>
      %cst_73 = arith.constant 5.000000e-01 : f32
      %161 = vector.broadcast %cst_73 : f32 to vector<1x128xf32>
      %162 = arith.mulf %161, %122 : vector<1x128xf32>
      %163 = arith.addf %120, %162 : vector<1x128xf32>
      %cst_74 = arith.constant 5.000000e-01 : f32
      %164 = vector.broadcast %cst_74 : f32 to vector<1x128xf32>
      %165 = arith.mulf %164, %123 : vector<1x128xf32>
      %166 = arith.addf %121, %165 : vector<1x128xf32>
      %167 = arith.subf %151, %145 : vector<1x128xf32>
      %168 = arith.subf %154, %148 : vector<1x128xf32>
      %169 = arith.mulf %167, %168 : vector<1x128xf32>
      %170 = arith.subf %163, %157 : vector<1x128xf32>
      %171 = arith.subf %166, %160 : vector<1x128xf32>
      %172 = arith.mulf %170, %171 : vector<1x128xf32>
      %173 = arith.maximumf %145, %157 : vector<1x128xf32>
      %174 = arith.maximumf %148, %160 : vector<1x128xf32>
      %175 = arith.minimumf %151, %163 : vector<1x128xf32>
      %176 = arith.minimumf %154, %166 : vector<1x128xf32>
      %177 = arith.subf %175, %173 : vector<1x128xf32>
      %cst_75 = arith.constant 0.000000e+00 : f32
      %178 = vector.broadcast %cst_75 : f32 to vector<1x128xf32>
      %179 = arith.maximumf %177, %178 : vector<1x128xf32>
      %180 = arith.subf %176, %174 : vector<1x128xf32>
      %cst_76 = arith.constant 0.000000e+00 : f32
      %181 = vector.broadcast %cst_76 : f32 to vector<1x128xf32>
      %182 = arith.maximumf %180, %181 : vector<1x128xf32>
      %183 = arith.mulf %179, %182 : vector<1x128xf32>
      %184 = arith.addf %169, %172 : vector<1x128xf32>
      %185 = arith.subf %184, %183 : vector<1x128xf32>
      %cst_77 = arith.constant 1.000000e-07 : f32
      %186 = vector.broadcast %cst_77 : f32 to vector<1x128xf32>
      %187 = arith.addf %185, %186 : vector<1x128xf32>
      %188 = arith.divf %183, %187 : vector<1x128xf32>
      %189 = arith.minimumf %145, %157 : vector<1x128xf32>
      %190 = arith.minimumf %148, %160 : vector<1x128xf32>
      %191 = arith.maximumf %151, %163 : vector<1x128xf32>
      %192 = arith.maximumf %154, %166 : vector<1x128xf32>
      %193 = arith.subf %191, %189 : vector<1x128xf32>
      %cst_78 = arith.constant 0.000000e+00 : f32
      %194 = vector.broadcast %cst_78 : f32 to vector<1x128xf32>
      %195 = arith.maximumf %193, %194 : vector<1x128xf32>
      %196 = arith.subf %192, %190 : vector<1x128xf32>
      %cst_79 = arith.constant 0.000000e+00 : f32
      %197 = vector.broadcast %cst_79 : f32 to vector<1x128xf32>
      %198 = arith.maximumf %196, %197 : vector<1x128xf32>
      %199 = arith.mulf %195, %198 : vector<1x128xf32>
      %200 = arith.subf %199, %185 : vector<1x128xf32>
      %cst_80 = arith.constant 1.000000e-07 : f32
      %201 = vector.broadcast %cst_80 : f32 to vector<1x128xf32>
      %202 = arith.addf %199, %201 : vector<1x128xf32>
      %203 = arith.divf %200, %202 : vector<1x128xf32>
      %204 = arith.subf %188, %203 : vector<1x128xf32>
      %cst_81 = arith.constant 2.000000e+00 : f32
      %205 = arith.mulf %cst_81, %71 : f32
      %cst_82 = arith.constant 1.000000e+00 : f32
      %206 = vector.broadcast %cst_82 : f32 to vector<1x128xf32>
      %207 = arith.subf %206, %204 : vector<1x128xf32>
      %208 = arith.mulf %115, %207 : vector<1x128xf32>
      %cst_83 = arith.constant dense<0.000000e+00> : vector<1xf32>
      %209 = vector.multi_reduction <add>, %208, %cst_83 [1] : vector<1x128xf32> to vector<1xf32>
      %210 = vector.shape_cast %209 : vector<1xf32> to vector<1x1xf32>
      %cst_84 = arith.constant dense<0.000000e+00> : vector<1xf32>
      %211 = vector.multi_reduction <add>, %210, %cst_84 [0] : vector<1x1xf32> to vector<1xf32>
      %212 = vector.shape_cast %211 : vector<1xf32> to vector<1x1xf32>
      %213 = vector.broadcast %205 : f32 to vector<1x1xf32>
      %214 = arith.mulf %213, %212 : vector<1x1xf32>
      %215 = tpu.iota {dimensions = array<i32: 1>} : vector<1x128xi32>
      %c0_i32_85 = arith.constant 0 : i32
      %216 = vector.broadcast %c0_i32_85 : i32 to vector<1x128xi32>
      %217 = arith.cmpi eq, %215, %216 : vector<1x128xi32>
      %cst_86 = arith.constant 0.000000e+00 : f32
      %218 = vector.broadcast %cst_86 : f32 to vector<1x128xf32>
      %219 = vector.shape_cast %108 : vector<1x1xf32> to vector<1x1xf32>
      %220 = vector.broadcast %219 : vector<1x1xf32> to vector<1x128xf32>
      %221 = arith.select %217, %220, %218 : vector<1x128xi1>, vector<1x128xf32>
      %c1_i32 = arith.constant 1 : i32
      %222 = vector.broadcast %c1_i32 : i32 to vector<1x128xi32>
      %223 = arith.cmpi eq, %215, %222 : vector<1x128xi32>
      %224 = vector.shape_cast %142 : vector<1x1xf32> to vector<1x1xf32>
      %225 = vector.broadcast %224 : vector<1x1xf32> to vector<1x128xf32>
      %226 = arith.select %223, %225, %221 : vector<1x128xi1>, vector<1x128xf32>
      %c2_i32 = arith.constant 2 : i32
      %227 = vector.broadcast %c2_i32 : i32 to vector<1x128xi32>
      %228 = arith.cmpi eq, %215, %227 : vector<1x128xi32>
      %229 = vector.shape_cast %214 : vector<1x1xf32> to vector<1x1xf32>
      %230 = vector.broadcast %229 : vector<1x1xf32> to vector<1x128xf32>
      %231 = arith.select %228, %230, %226 : vector<1x128xi1>, vector<1x128xf32>
      %c5_i32 = arith.constant 5 : i32
      %232 = vector.broadcast %c5_i32 : i32 to vector<1x128xi32>
      %233 = arith.cmpi eq, %215, %232 : vector<1x128xi32>
      %234 = arith.addf %108, %142 : vector<1x1xf32>
      %235 = arith.addf %234, %214 : vector<1x1xf32>
      %236 = vector.shape_cast %235 : vector<1x1xf32> to vector<1x1xf32>
      %237 = vector.broadcast %236 : vector<1x1xf32> to vector<1x128xf32>
      %238 = arith.select %233, %237, %231 : vector<1x128xi1>, vector<1x128xf32>
      %c0_87 = arith.constant 0 : index
      %c0_88 = arith.constant 0 : index
      %239 = vector.load %arg8[%c0_87, %c0_88] : memref<1x128xf32, #tpu.memory_space<vmem>>, vector<1x128xf32>
      tpu.vector_store %arg8[%c0_87, %c0_88], %238 {strides = array<i32>} : memref<1x128xf32, #tpu.memory_space<vmem>>, vector<1x128xf32>,
    } else {
    }
    %c0 = arith.constant 0 : index
    %c0_2 = arith.constant 0 : index
    %4 = vector.load %arg5[%c0, %c0_2] : memref<8x256xbf16, #tpu.memory_space<vmem>>, vector<8x256xbf16>
    %5 = arith.extf %4 : vector<8x256xbf16> to vector<8x256xf32>
    %c0_3 = arith.constant 0 : index
    %c0_4 = arith.constant 0 : index
    %6 = vector.load %arg6[%c0_3, %c0_4] : memref<8x256xi8, #tpu.memory_space<vmem>>, vector<8x256xi8>
    %7 = arith.sitofp %6 : vector<8x256xi8> to vector<8x256xf32>
    %8 = math.absf %5 : vector<8x256xf32>
    %cst = arith.constant 0.000000e+00 : f32
    %9 = vector.broadcast %cst : f32 to vector<8x256xf32>
    %10 = arith.subf %9, %8 : vector<8x256xf32>
    %11 = math.exp %10 : vector<8x256xf32>
    %cst_5 = arith.constant 1.000000e+00 : f32
    %12 = vector.broadcast %cst_5 : f32 to vector<8x256xf32>
    %13 = arith.addf %12, %11 : vector<8x256xf32>
    %14 = tpu.reciprocal %13 {approx = true} : vector<8x256xf32> -> vector<8x256xf32>
    %cst_6 = arith.constant 0.000000e+00 : f32
    %15 = vector.broadcast %cst_6 : f32 to vector<8x256xf32>
    %16 = arith.cmpf oge, %5, %15 : vector<8x256xf32>
    %cst_7 = arith.constant 1.000000e+00 : f32
    %17 = vector.broadcast %cst_7 : f32 to vector<8x256xf32>
    %18 = arith.select %16, %17, %11 : vector<8x256xi1>, vector<8x256xf32>
    %19 = arith.mulf %18, %14 : vector<8x256xf32>
    %cst_8 = arith.constant 0.000000e+00 : f32
    %20 = vector.broadcast %cst_8 : f32 to vector<8x256xf32>
    %21 = arith.maximumf %5, %20 : vector<8x256xf32>
    %22 = math.log %13 : vector<8x256xf32>
    %23 = arith.addf %21, %22 : vector<8x256xf32>
    %24 = arith.mulf %5, %7 : vector<8x256xf32>
    %25 = arith.subf %23, %24 : vector<8x256xf32>
    %26 = arith.mulf %19, %7 : vector<8x256xf32>
    %27 = arith.addf %19, %7 : vector<8x256xf32>
    %cst_9 = arith.constant 2.000000e+00 : f32
    %28 = vector.broadcast %cst_9 : f32 to vector<8x256xf32>
    %29 = arith.mulf %28, %26 : vector<8x256xf32>
    %30 = arith.subf %27, %29 : vector<8x256xf32>
    %cst_10 = arith.constant 5.000000e-01 : f32
    %31 = vector.broadcast %cst_10 : f32 to vector<8x256xf32>
    %32 = arith.mulf %31, %7 : vector<8x256xf32>
    %cst_11 = arith.constant 7.500000e-01 : f32
    %33 = vector.broadcast %cst_11 : f32 to vector<8x256xf32>
    %34 = arith.subf %33, %32 : vector<8x256xf32>
    %35 = arith.mulf %34, %25 : vector<8x256xf32>
    %36 = arith.mulf %35, %30 : vector<8x256xf32>
    %37 = arith.mulf %36, %30 : vector<8x256xf32>
    %c0_12 = arith.constant 0 : index
    %c0_13 = arith.constant 0 : index
    %38 = vector.load %arg9[%c0_12, %c0_13] : memref<8x1xf32, #tpu.memory_space<vmem>>, vector<8x1xf32>
    %cst_14 = arith.constant dense<0.000000e+00> : vector<8xf32>
    %39 = vector.multi_reduction <add>, %37, %cst_14 [1] : vector<8x256xf32> to vector<8xf32>
    %40 = vector.shape_cast %39 : vector<8xf32> to vector<8x1xf32>
    %41 = arith.addf %38, %40 : vector<8x1xf32>
    %c0_15 = arith.constant 0 : index
    %c0_16 = arith.constant 0 : index
    %42 = vector.load %arg9[%c0_15, %c0_16] : memref<8x1xf32, #tpu.memory_space<vmem>>, vector<8x1xf32>
    tpu.vector_store %arg9[%c0_15, %c0_16], %41 {strides = array<i32>} : memref<8x1xf32, #tpu.memory_space<vmem>>, vector<8x1xf32>,
    %c0_17 = arith.constant 0 : index
    %c0_18 = arith.constant 0 : index
    %43 = vector.load %arg10[%c0_17, %c0_18] : memref<8x1xf32, #tpu.memory_space<vmem>>, vector<8x1xf32>
    %cst_19 = arith.constant dense<0.000000e+00> : vector<8xf32>
    %44 = vector.multi_reduction <add>, %26, %cst_19 [1] : vector<8x256xf32> to vector<8xf32>
    %45 = vector.shape_cast %44 : vector<8xf32> to vector<8x1xf32>
    %46 = arith.addf %43, %45 : vector<8x1xf32>
    %c0_20 = arith.constant 0 : index
    %c0_21 = arith.constant 0 : index
    %47 = vector.load %arg10[%c0_20, %c0_21] : memref<8x1xf32, #tpu.memory_space<vmem>>, vector<8x1xf32>
    tpu.vector_store %arg10[%c0_20, %c0_21], %46 {strides = array<i32>} : memref<8x1xf32, #tpu.memory_space<vmem>>, vector<8x1xf32>,
    %c0_22 = arith.constant 0 : index
    %c0_23 = arith.constant 0 : index
    %48 = vector.load %arg11[%c0_22, %c0_23] : memref<8x1xf32, #tpu.memory_space<vmem>>, vector<8x1xf32>
    %cst_24 = arith.constant dense<0.000000e+00> : vector<8xf32>
    %49 = vector.multi_reduction <add>, %19, %cst_24 [1] : vector<8x256xf32> to vector<8xf32>
    %50 = vector.shape_cast %49 : vector<8xf32> to vector<8x1xf32>
    %51 = arith.addf %48, %50 : vector<8x1xf32>
    %c0_25 = arith.constant 0 : index
    %c0_26 = arith.constant 0 : index
    %52 = vector.load %arg11[%c0_25, %c0_26] : memref<8x1xf32, #tpu.memory_space<vmem>>, vector<8x1xf32>
    tpu.vector_store %arg11[%c0_25, %c0_26], %51 {strides = array<i32>} : memref<8x1xf32, #tpu.memory_space<vmem>>, vector<8x1xf32>,
    %c0_27 = arith.constant 0 : index
    %c0_28 = arith.constant 0 : index
    %53 = vector.load %arg12[%c0_27, %c0_28] : memref<8x1xf32, #tpu.memory_space<vmem>>, vector<8x1xf32>
    %cst_29 = arith.constant dense<0.000000e+00> : vector<8xf32>
    %54 = vector.multi_reduction <add>, %7, %cst_29 [1] : vector<8x256xf32> to vector<8xf32>
    %55 = vector.shape_cast %54 : vector<8xf32> to vector<8x1xf32>
    %56 = arith.addf %53, %55 : vector<8x1xf32>
    %c0_30 = arith.constant 0 : index
    %c0_31 = arith.constant 0 : index
    %57 = vector.load %arg12[%c0_30, %c0_31] : memref<8x1xf32, #tpu.memory_space<vmem>>, vector<8x1xf32>
    tpu.vector_store %arg12[%c0_30, %c0_31], %56 {strides = array<i32>} : memref<8x1xf32, #tpu.memory_space<vmem>>, vector<8x1xf32>,
    %58 = arith.extui %1 : i1 to i32
    %c0_i32_32 = arith.constant 0 : i32
    %59 = arith.cmpi ne, %58, %c0_i32_32 : i32
    scf.if %59 {
      %c0_33 = arith.constant 0 : index
      %c0_34 = arith.constant 0 : index
      %60 = vector.load %arg8[%c0_33, %c0_34] : memref<1x128xf32, #tpu.memory_space<vmem>>, vector<1x128xf32>
      %c2 = arith.constant 2 : index
      %61 = memref.load %arg1[%c2] : memref<3xi32, #tpu.memory_space<smem>>
      %62 = arith.sitofp %61 : i32 to f32
      %cst_35 = arith.constant 1.000000e+00 : f32
      %63 = arith.maximumf %62, %cst_35 : f32
      %cst_36 = arith.constant 1.000000e+00 : f32
      %64 = arith.divf %cst_36, %63 : f32
      %65 = tpu.iota {dimensions = array<i32: 0>} : vector<8x1xi32>
      %c1 = arith.constant 1 : index
      %66 = memref.load %arg1[%c1] : memref<3xi32, #tpu.memory_space<smem>>
      %67 = vector.broadcast %66 : i32 to vector<8x1xi32>
      %68 = arith.cmpi slt, %65, %67 : vector<8x1xi32>
      %69 = arith.extui %68 : vector<8x1xi1> to vector<8x1xi32>
      %70 = arith.sitofp %69 : vector<8x1xi32> to vector<8x1xf32>
      %c0_37 = arith.constant 0 : index
      %c0_38 = arith.constant 0 : index
      %71 = vector.load %arg9[%c0_37, %c0_38] : memref<8x1xf32, #tpu.memory_space<vmem>>, vector<8x1xf32>
      %72 = arith.mulf %70, %71 : vector<8x1xf32>
      %cst_39 = arith.constant dense<0.000000e+00> : vector<8xf32>
      %73 = vector.multi_reduction <add>, %72, %cst_39 [1] : vector<8x1xf32> to vector<8xf32>
      %74 = vector.shape_cast %73 : vector<8xf32> to vector<8x1xf32>
      %cst_40 = arith.constant dense<0.000000e+00> : vector<1xf32>
      %75 = vector.multi_reduction <add>, %74, %cst_40 [0] : vector<8x1xf32> to vector<1xf32>
      %76 = vector.shape_cast %75 : vector<1xf32> to vector<1x1xf32>
      %cst_41 = arith.constant 3.906250e-03 : f32
      %77 = arith.mulf %cst_41, %64 : f32
      %78 = vector.broadcast %77 : f32 to vector<1x1xf32>
      %79 = arith.mulf %76, %78 : vector<1x1xf32>
      %c0_42 = arith.constant 0 : index
      %c0_43 = arith.constant 0 : index
      %80 = vector.load %arg10[%c0_42, %c0_43] : memref<8x1xf32, #tpu.memory_space<vmem>>, vector<8x1xf32>
      %cst_44 = arith.constant 2.000000e+00 : f32
      %81 = vector.broadcast %cst_44 : f32 to vector<8x1xf32>
      %82 = arith.mulf %81, %80 : vector<8x1xf32>
      %cst_45 = arith.constant 1.000000e+00 : f32
      %83 = vector.broadcast %cst_45 : f32 to vector<8x1xf32>
      %84 = arith.addf %82, %83 : vector<8x1xf32>
      %c0_46 = arith.constant 0 : index
      %c0_47 = arith.constant 0 : index
      %85 = vector.load %arg11[%c0_46, %c0_47] : memref<8x1xf32, #tpu.memory_space<vmem>>, vector<8x1xf32>
      %c0_48 = arith.constant 0 : index
      %c0_49 = arith.constant 0 : index
      %86 = vector.load %arg12[%c0_48, %c0_49] : memref<8x1xf32, #tpu.memory_space<vmem>>, vector<8x1xf32>
      %87 = arith.addf %85, %86 : vector<8x1xf32>
      %cst_50 = arith.constant 1.000000e+00 : f32
      %88 = vector.broadcast %cst_50 : f32 to vector<8x1xf32>
      %89 = arith.addf %87, %88 : vector<8x1xf32>
      %90 = arith.divf %84, %89 : vector<8x1xf32>
      %cst_51 = arith.constant 1.000000e+00 : f32
      %91 = vector.broadcast %cst_51 : f32 to vector<8x1xf32>
      %92 = arith.subf %91, %90 : vector<8x1xf32>
      %93 = arith.mulf %70, %92 : vector<8x1xf32>
      %cst_52 = arith.constant dense<0.000000e+00> : vector<8xf32>
      %94 = vector.multi_reduction <add>, %93, %cst_52 [1] : vector<8x1xf32> to vector<8xf32>
      %95 = vector.shape_cast %94 : vector<8xf32> to vector<8x1xf32>
      %cst_53 = arith.constant dense<0.000000e+00> : vector<1xf32>
      %96 = vector.multi_reduction <add>, %95, %cst_53 [0] : vector<8x1xf32> to vector<1xf32>
      %97 = vector.shape_cast %96 : vector<1xf32> to vector<1x1xf32>
      %98 = vector.broadcast %64 : f32 to vector<1x1xf32>
      %99 = arith.mulf %97, %98 : vector<1x1xf32>
      %100 = tpu.iota {dimensions = array<i32: 1>} : vector<1x128xi32>
      %cst_54 = arith.constant 0.000000e+00 : f32
      %101 = vector.broadcast %cst_54 : f32 to vector<1x128xf32>
      %c3_i32 = arith.constant 3 : i32
      %102 = vector.broadcast %c3_i32 : i32 to vector<1x128xi32>
      %103 = arith.cmpi eq, %100, %102 : vector<1x128xi32>
      %104 = vector.shape_cast %79 : vector<1x1xf32> to vector<1x1xf32>
      %105 = vector.broadcast %104 : vector<1x1xf32> to vector<1x128xf32>
      %106 = arith.select %103, %105, %101 : vector<1x128xi1>, vector<1x128xf32>
      %107 = arith.addf %60, %106 : vector<1x128xf32>
      %c4_i32 = arith.constant 4 : i32
      %108 = vector.broadcast %c4_i32 : i32 to vector<1x128xi32>
      %109 = arith.cmpi eq, %100, %108 : vector<1x128xi32>
      %110 = vector.shape_cast %99 : vector<1x1xf32> to vector<1x1xf32>
      %111 = vector.broadcast %110 : vector<1x1xf32> to vector<1x128xf32>
      %112 = arith.select %109, %111, %101 : vector<1x128xi1>, vector<1x128xf32>
      %113 = arith.addf %107, %112 : vector<1x128xf32>
      %c5_i32 = arith.constant 5 : i32
      %114 = vector.broadcast %c5_i32 : i32 to vector<1x128xi32>
      %115 = arith.cmpi eq, %100, %114 : vector<1x128xi32>
      %116 = arith.addf %79, %99 : vector<1x1xf32>
      %117 = vector.shape_cast %116 : vector<1x1xf32> to vector<1x1xf32>
      %118 = vector.broadcast %117 : vector<1x1xf32> to vector<1x128xf32>
      %119 = arith.select %115, %118, %101 : vector<1x128xi1>, vector<1x128xf32>
      %120 = arith.addf %113, %119 : vector<1x128xf32>
      %c0_55 = arith.constant 0 : index
      %c0_56 = arith.constant 0 : index
      %121 = vector.load %arg7[%c0_55, %c0_56] : memref<1x128xf32, #tpu.memory_space<vmem>>, vector<1x128xf32>
      tpu.vector_store %arg7[%c0_55, %c0_56], %120 {strides = array<i32>} : memref<1x128xf32, #tpu.memory_space<vmem>>, vector<1x128xf32>,
    } else {
    }
    return
  }
  func.func @transform_0(%arg0: i32, %arg1: memref<3xi32, #tpu.memory_space<smem>>) -> (i32, i32) {
    %c0_i32 = arith.constant 0 : i32
    %c0_i32_0 = arith.constant 0 : i32
    %c0_i32_1 = arith.constant 0 : i32
    return %c0_i32, %c0_i32_0 : i32, i32
  }
  func.func @transform_1(%arg0: i32, %arg1: memref<3xi32, #tpu.memory_space<smem>>) -> (i32, i32) {
    %c0_i32 = arith.constant 0 : i32
    %c0_i32_0 = arith.constant 0 : i32
    %c0_i32_1 = arith.constant 0 : i32
    return %c0_i32, %c0_i32_0 : i32, i32
  }
  func.func @transform_2(%arg0: i32, %arg1: memref<3xi32, #tpu.memory_space<smem>>) -> (i32, i32) {
    %c0_i32 = arith.constant 0 : i32
    %c0_i32_0 = arith.constant 0 : i32
    %c0_i32_1 = arith.constant 0 : i32
    return %c0_i32, %c0_i32_0 : i32, i32
  }
  func.func @transform_3(%arg0: i32, %arg1: memref<3xi32, #tpu.memory_space<smem>>) -> (i32, i32) {
    %c0_i32 = arith.constant 0 : i32
    %c0_i32_0 = arith.constant 0 : i32
    return %c0_i32, %arg0 : i32, i32
  }
  func.func @transform_4(%arg0: i32, %arg1: memref<3xi32, #tpu.memory_space<smem>>) -> (i32, i32) {
    %c0_i32 = arith.constant 0 : i32
    %c0_i32_0 = arith.constant 0 : i32
    return %c0_i32, %arg0 : i32, i32
  }
  func.func @transform_5(%arg0: i32, %arg1: memref<3xi32, #tpu.memory_space<smem>>) -> (i32, i32) {
    %c0_i32 = arith.constant 0 : i32
    %c0_i32_0 = arith.constant 0 : i32
    %c0_i32_1 = arith.constant 0 : i32
    return %c0_i32, %c0_i32_0 : i32, i32
  }
}

module attributes {stable_mosaic.version = 11 : i64} {
  func.func @kernel(%arg0: i32, %arg1: memref<3xi32, #tpu.memory_space<smem>>, %arg2: memref<5x16xf32, #tpu.memory_space<vmem>>, %arg3: memref<1x16xi32, #tpu.memory_space<vmem>>, %arg4: memref<8x128xf32, #tpu.memory_space<vmem>>, %arg5: memref<8x256xbf16, #tpu.memory_space<vmem>>, %arg6: memref<8x256xi8, #tpu.memory_space<vmem>>, %arg7: memref<1x128xf32, #tpu.memory_space<vmem>>, %arg8: memref<1x128xf32, #tpu.memory_space<vmem>>, %arg9: memref<8x1xf32, #tpu.memory_space<vmem>>, %arg10: memref<8x1xf32, #tpu.memory_space<vmem>>, %arg11: memref<8x1xf32, #tpu.memory_space<vmem>>, %arg12: memref<8x1xf32, #tpu.memory_space<vmem>>) attributes {dimension_semantics = [#tpu.dimension_semantics<arbitrary>], iteration_bounds = array<i64: 1>, scalar_prefetch = 1 : i64, scratch_operands = 5 : i64, tpu.core_type = #tpu.core_type<tc>, window_params = [{pipeline_mode = #tpu.pipeline_mode<synchronous>, transform_indices = @transform_0, window_bounds = array<i64: 5, 16>}, {pipeline_mode = #tpu.pipeline_mode<synchronous>, transform_indices = @transform_1, window_bounds = array<i64: 1, 16>}, {pipeline_mode = #tpu.pipeline_mode<synchronous>, transform_indices = @transform_2, window_bounds = array<i64: 8, 128>}, {transform_indices = @transform_3, window_bounds = array<i64: 8, 256>}, {transform_indices = @transform_4, window_bounds = array<i64: 8, 256>}, {pipeline_mode = #tpu.pipeline_mode<synchronous>, transform_indices = @transform_5, window_bounds = array<i64: 1, 128>}]} {
    %c0_i32 = arith.constant 0 : i32
    %0 = arith.cmpi eq, %arg0, %c0_i32 : i32
    %c0_i32_0 = arith.constant 0 : i32
    %1 = arith.cmpi eq, %arg0, %c0_i32_0 : i32
    %2 = arith.extui %0 : i1 to i32
    %c0_i32_1 = arith.constant 0 : i32
    %3 = arith.cmpi ne, %2, %c0_i32_1 : i32
    scf.if %3 {
      %cst_33 = arith.constant 0.000000e+00 : f32
      %60 = vector.broadcast %cst_33 : f32 to vector<8x1xf32>
      %c0_34 = arith.constant 0 : index
      %c0_35 = arith.constant 0 : index
      %61 = vector.load %arg9[%c0_34, %c0_35] : memref<8x1xf32, #tpu.memory_space<vmem>>, vector<8x1xf32>
      tpu.vector_store %arg9[%c0_34, %c0_35], %60 {strides = array<i32>} : memref<8x1xf32, #tpu.memory_space<vmem>>, vector<8x1xf32>,
      %cst_36 = arith.constant 0.000000e+00 : f32
      %62 = vector.broadcast %cst_36 : f32 to vector<8x1xf32>
      %c0_37 = arith.constant 0 : index
      %c0_38 = arith.constant 0 : index
      %63 = vector.load %arg10[%c0_37, %c0_38] : memref<8x1xf32, #tpu.memory_space<vmem>>, vector<8x1xf32>
      tpu.vector_store %arg10[%c0_37, %c0_38], %62 {strides = array<i32>} : memref<8x1xf32, #tpu.memory_space<vmem>>, vector<8x1xf32>,
      %cst_39 = arith.constant 0.000000e+00 : f32
      %64 = vector.broadcast %cst_39 : f32 to vector<8x1xf32>
      %c0_40 = arith.constant 0 : index
      %c0_41 = arith.constant 0 : index
      %65 = vector.load %arg11[%c0_40, %c0_41] : memref<8x1xf32, #tpu.memory_space<vmem>>, vector<8x1xf32>
      tpu.vector_store %arg11[%c0_40, %c0_41], %64 {strides = array<i32>} : memref<8x1xf32, #tpu.memory_space<vmem>>, vector<8x1xf32>,
      %cst_42 = arith.constant 0.000000e+00 : f32
      %66 = vector.broadcast %cst_42 : f32 to vector<8x1xf32>
      %c0_43 = arith.constant 0 : index
      %c0_44 = arith.constant 0 : index
      %67 = vector.load %arg12[%c0_43, %c0_44] : memref<8x1xf32, #tpu.memory_space<vmem>>, vector<8x1xf32>
      tpu.vector_store %arg12[%c0_43, %c0_44], %66 {strides = array<i32>} : memref<8x1xf32, #tpu.memory_space<vmem>>, vector<8x1xf32>,
      %c2 = arith.constant 2 : index
      %68 = memref.load %arg1[%c2] : memref<3xi32, #tpu.memory_space<smem>>
      %69 = arith.sitofp %68 : i32 to f32
      %cst_45 = arith.constant 1.000000e+00 : f32
      %70 = arith.maximumf %69, %cst_45 : f32
      %cst_46 = arith.constant 1.000000e+00 : f32
      %71 = arith.divf %cst_46, %70 : f32
      %c0_47 = arith.constant 0 : index
      %c0_48 = arith.constant 0 : index
      %72 = vector.load %arg2[%c0_47, %c0_48] : memref<5x16xf32, #tpu.memory_space<vmem>>, vector<5x16xf32>
      %c0_49 = arith.constant 0 : index
      %c0_50 = arith.constant 0 : index
      %73 = vector.load %arg3[%c0_49, %c0_50] : memref<1x16xi32, #tpu.memory_space<vmem>>, vector<1x16xi32>
      %cst_51 = arith.constant dense<0xFF800000> : vector<16xf32>
      %74 = vector.multi_reduction <maximumf>, %72, %cst_51 [0] : vector<5x16xf32> to vector<16xf32>
      %75 = vector.shape_cast %74 : vector<16xf32> to vector<1x16xf32>
      %76 = vector.broadcast %75 : vector<1x16xf32> to vector<5x16xf32>
      %77 = arith.subf %72, %76 : vector<5x16xf32>
      %78 = math.exp %77 : vector<5x16xf32>
      %cst_52 = arith.constant dense<0.000000e+00> : vector<16xf32>
      %79 = vector.multi_reduction <add>, %78, %cst_52 [0] : vector<5x16xf32> to vector<16xf32>
      %80 = vector.shape_cast %79 : vector<16xf32> to vector<1x16xf32>
      %81 = math.log %80 : vector<1x16xf32>
      %82 = arith.addf %75, %81 : vector<1x16xf32>
      %83 = tpu.iota {dimensions = array<i32: 0>} : vector<5x16xi32>
      %84 = vector.broadcast %73 : vector<1x16xi32> to vector<5x16xi32>
      %85 = arith.cmpi eq, %83, %84 : vector<5x16xi32>
      %86 = arith.extui %85 : vector<5x16xi1> to vector<5x16xi32>
      %87 = arith.sitofp %86 : vector<5x16xi32> to vector<5x16xf32>
      %88 = arith.mulf %87, %72 : vector<5x16xf32>
      %cst_53 = arith.constant dense<0.000000e+00> : vector<16xf32>
      %89 = vector.multi_reduction <add>, %88, %cst_53 [0] : vector<5x16xf32> to vector<16xf32>
      %90 = vector.shape_cast %89 : vector<16xf32> to vector<1x16xf32>
      %91 = arith.subf %82, %90 : vector<1x16xf32>
      %c4_i32 = arith.constant 4 : i32
      %92 = vector.broadcast %c4_i32 : i32 to vector<1x16xi32>
      %93 = arith.cmpi eq, %73, %92 : vector<1x16xi32>
      %cst_54 = arith.constant 1.000000e-01 : f32
      %cst_55 = arith.constant 1.000000e+00 : f32
      %94 = vector.broadcast %cst_54 : f32 to vector<1x16xf32>
      %95 = vector.broadcast %cst_55 : f32 to vector<1x16xf32>
      %96 = arith.select %93, %94, %95 : vector<1x16xi1>, vector<1x16xf32>
      %97 = arith.mulf %96, %91 : vector<1x16xf32>
      %cst_56 = arith.constant dense<0.000000e+00> : vector<1xf32>
      %98 = vector.multi_reduction <add>, %97, %cst_56 [1] : vector<1x16xf32> to vector<1xf32>
      %99 = vector.shape_cast %98 : vector<1xf32> to vector<1x1xf32>
      %cst_57 = arith.constant dense<0.000000e+00> : vector<1xf32>
      %100 = vector.multi_reduction <add>, %99, %cst_57 [0] : vector<1x1xf32> to vector<1xf32>
      %101 = vector.shape_cast %100 : vector<1xf32> to vector<1x1xf32>
      %cst_58 = arith.constant 1.000000e+00 : f32
      %102 = vector.broadcast %cst_58 : f32 to vector<1x1xf32>
      %103 = arith.mulf %102, %101 : vector<1x1xf32>
      %cst_59 = arith.constant dense<0.000000e+00> : vector<1xf32>
      %104 = vector.multi_reduction <add>, %96, %cst_59 [1] : vector<1x16xf32> to vector<1xf32>
      %105 = vector.shape_cast %104 : vector<1xf32> to vector<1x1xf32>
      %cst_60 = arith.constant dense<0.000000e+00> : vector<1xf32>
      %106 = vector.multi_reduction <add>, %105, %cst_60 [0] : vector<1x1xf32> to vector<1xf32>
      %107 = vector.shape_cast %106 : vector<1xf32> to vector<1x1xf32>
      %108 = arith.divf %103, %107 : vector<1x1xf32>
      %c0_61 = arith.constant 0 : index
      %c0_62 = arith.constant 0 : index
      %109 = vector.load %arg4[%c0_61, %c0_62] : memref<8x128xf32, #tpu.memory_space<vmem>>, vector<8x128xf32>
      %110 = tpu.iota {dimensions = array<i32: 1>} : vector<1x128xi32>
      %c0_63 = arith.constant 0 : index
      %111 = memref.load %arg1[%c0_63] : memref<3xi32, #tpu.memory_space<smem>>
      %112 = vector.broadcast %111 : i32 to vector<1x128xi32>
      %113 = arith.cmpi slt, %110, %112 : vector<1x128xi32>
      %114 = arith.extui %113 : vector<1x128xi1> to vector<1x128xi32>
      %115 = arith.sitofp %114 : vector<1x128xi32> to vector<1x128xf32>
      %116 = vector.extract_strided_slice %109 {offsets = [0, 0], sizes = [1, 128], strides = [1, 1]} : vector<8x128xf32> to vector<1x128xf32>
      %117 = vector.extract_strided_slice %109 {offsets = [1, 0], sizes = [1, 128], strides = [1, 1]} : vector<8x128xf32> to vector<1x128xf32>
      %118 = vector.extract_strided_slice %109 {offsets = [2, 0], sizes = [1, 128], strides = [1, 1]} : vector<8x128xf32> to vector<1x128xf32>
      %119 = vector.extract_strided_slice %109 {offsets = [3, 0], sizes = [1, 128], strides = [1, 1]} : vector<8x128xf32> to vector<1x128xf32>
      %120 = vector.extract_strided_slice %109 {offsets = [4, 0], sizes = [1, 128], strides = [1, 1]} : vector<8x128xf32> to vector<1x128xf32>
      %121 = vector.extract_strided_slice %109 {offsets = [5, 0], sizes = [1, 128], strides = [1, 1]} : vector<8x128xf32> to vector<1x128xf32>
      %122 = vector.extract_strided_slice %109 {offsets = [6, 0], sizes = [1, 128], strides = [1, 1]} : vector<8x128xf32> to vector<1x128xf32>
      %123 = vector.extract_strided_slice %109 {offsets = [7, 0], sizes = [1, 128], strides = [1, 1]} : vector<8x128xf32> to vector<1x128xf32>
      %124 = arith.subf %116, %120 : vector<1x128xf32>
      %125 = math.absf %124 : vector<1x128xf32>
      %126 = arith.subf %117, %121 : vector<1x128xf32>
      %127 = math.absf %126 : vector<1x128xf32>
      %128 = arith.addf %125, %127 : vector<1x128xf32>
      %129 = arith.subf %118, %122 : vector<1x128xf32>
      %130 = math.absf %129 : vector<1x128xf32>
      %131 = arith.addf %128, %130 : vector<1x128xf32>
      %132 = arith.subf %119, %123 : vector<1x128xf32>
      %133 = math.absf %132 : vector<1x128xf32>
      %134 = arith.addf %131, %133 : vector<1x128xf32>
      %cst_64 = arith.constant 5.000000e+00 : f32
      %135 = arith.mulf %cst_64, %71 : f32
      %136 = arith.mulf %115, %134 : vector<1x128xf32>
      %cst_65 = arith.constant dense<0.000000e+00> : vector<1xf32>
      %137 = vector.multi_reduction <add>, %136, %cst_65 [1] : vector<1x128xf32> to vector<1xf32>
      %138 = vector.shape_cast %137 : vector<1xf32> to vector<1x1xf32>
      %cst_66 = arith.constant dense<0.000000e+00> : vector<1xf32>
      %139 = vector.multi_reduction <add>, %138, %cst_66 [0] : vector<1x1xf32> to vector<1xf32>
      %140 = vector.shape_cast %139 : vector<1xf32> to vector<1x1xf32>
      %141 = vector.broadcast %135 : f32 to vector<1x1xf32>
      %142 = arith.mulf %141, %140 : vector<1x1xf32>
      %cst_67 = arith.constant 5.000000e-01 : f32
      %143 = vector.broadcast %cst_67 : f32 to vector<1x128xf32>
      %144 = arith.mulf %143, %118 : vector<1x128xf32>
      %145 = arith.subf %116, %144 : vector<1x128xf32>
      %cst_68 = arith.constant 5.000000e-01 : f32
      %146 = vector.broadcast %cst_68 : f32 to vector<1x128xf32>
      %147 = arith.mulf %146, %119 : vector<1x128xf32>
      %148 = arith.subf %117, %147 : vector<1x128xf32>
      %cst_69 = arith.constant 5.000000e-01 : f32
      %149 = vector.broadcast %cst_69 : f32 to vector<1x128xf32>
      %150 = arith.mulf %149, %118 : vector<1x128xf32>
      %151 = arith.addf %116, %150 : vector<1x128xf32>
      %cst_70 = arith.constant 5.000000e-01 : f32
      %152 = vector.broadcast %cst_70 : f32 to vector<1x128xf32>
      %153 = arith.mulf %152, %119 : vector<1x128xf32>
      %154 = arith.addf %117, %153 : vector<1x128xf32>
      %cst_71 = arith.constant 5.000000e-01 : f32
      %155 = vector.broadcast %cst_71 : f32 to vector<1x128xf32>
      %156 = arith.mulf %155, %122 : vector<1x128xf32>
      %157 = arith.subf %120, %156 : vector<1x128xf32>
      %cst_72 = arith.constant 5.000000e-01 : f32
      %158 = vector.broadcast %cst_72 : f32 to vector<1x128xf32>
      %159 = arith.mulf %158, %123 : vector<1x128xf32>
      %160 = arith.subf %121, %159 : vector<1x128xf32>
      %cst_73 = arith.constant 5.000000e-01 : f32
      %161 = vector.broadcast %cst_73 : f32 to vector<1x128xf32>
      %162 = arith.mulf %161, %122 : vector<1x128xf32>
      %163 = arith.addf %120, %162 : vector<1x128xf32>
      %cst_74 = arith.constant 5.000000e-01 : f32
      %164 = vector.broadcast %cst_74 : f32 to vector<1x128xf32>
      %165 = arith.mulf %164, %123 : vector<1x128xf32>
      %166 = arith.addf %121, %165 : vector<1x128xf32>
      %167 = arith.subf %151, %145 : vector<1x128xf32>
      %168 = arith.subf %154, %148 : vector<1x128xf32>
      %169 = arith.mulf %167, %168 : vector<1x128xf32>
      %170 = arith.subf %163, %157 : vector<1x128xf32>
      %171 = arith.subf %166, %160 : vector<1x128xf32>
      %172 = arith.mulf %170, %171 : vector<1x128xf32>
      %173 = arith.maximumf %145, %157 : vector<1x128xf32>
      %174 = arith.maximumf %148, %160 : vector<1x128xf32>
      %175 = arith.minimumf %151, %163 : vector<1x128xf32>
      %176 = arith.minimumf %154, %166 : vector<1x128xf32>
      %177 = arith.subf %175, %173 : vector<1x128xf32>
      %cst_75 = arith.constant 0.000000e+00 : f32
      %178 = vector.broadcast %cst_75 : f32 to vector<1x128xf32>
      %179 = arith.maximumf %177, %178 : vector<1x128xf32>
      %180 = arith.subf %176, %174 : vector<1x128xf32>
      %cst_76 = arith.constant 0.000000e+00 : f32
      %181 = vector.broadcast %cst_76 : f32 to vector<1x128xf32>
      %182 = arith.maximumf %180, %181 : vector<1x128xf32>
      %183 = arith.mulf %179, %182 : vector<1x128xf32>
      %184 = arith.addf %169, %172 : vector<1x128xf32>
      %185 = arith.subf %184, %183 : vector<1x128xf32>
      %cst_77 = arith.constant 1.000000e-07 : f32
      %186 = vector.broadcast %cst_77 : f32 to vector<1x128xf32>
      %187 = arith.addf %185, %186 : vector<1x128xf32>
      %188 = arith.divf %183, %187 : vector<1x128xf32>
      %189 = arith.minimumf %145, %157 : vector<1x128xf32>
      %190 = arith.minimumf %148, %160 : vector<1x128xf32>
      %191 = arith.maximumf %151, %163 : vector<1x128xf32>
      %192 = arith.maximumf %154, %166 : vector<1x128xf32>
      %193 = arith.subf %191, %189 : vector<1x128xf32>
      %cst_78 = arith.constant 0.000000e+00 : f32
      %194 = vector.broadcast %cst_78 : f32 to vector<1x128xf32>
      %195 = arith.maximumf %193, %194 : vector<1x128xf32>
      %196 = arith.subf %192, %190 : vector<1x128xf32>
      %cst_79 = arith.constant 0.000000e+00 : f32
      %197 = vector.broadcast %cst_79 : f32 to vector<1x128xf32>
      %198 = arith.maximumf %196, %197 : vector<1x128xf32>
      %199 = arith.mulf %195, %198 : vector<1x128xf32>
      %200 = arith.subf %199, %185 : vector<1x128xf32>
      %cst_80 = arith.constant 1.000000e-07 : f32
      %201 = vector.broadcast %cst_80 : f32 to vector<1x128xf32>
      %202 = arith.addf %199, %201 : vector<1x128xf32>
      %203 = arith.divf %200, %202 : vector<1x128xf32>
      %204 = arith.subf %188, %203 : vector<1x128xf32>
      %cst_81 = arith.constant 2.000000e+00 : f32
      %205 = arith.mulf %cst_81, %71 : f32
      %cst_82 = arith.constant 1.000000e+00 : f32
      %206 = vector.broadcast %cst_82 : f32 to vector<1x128xf32>
      %207 = arith.subf %206, %204 : vector<1x128xf32>
      %208 = arith.mulf %115, %207 : vector<1x128xf32>
      %cst_83 = arith.constant dense<0.000000e+00> : vector<1xf32>
      %209 = vector.multi_reduction <add>, %208, %cst_83 [1] : vector<1x128xf32> to vector<1xf32>
      %210 = vector.shape_cast %209 : vector<1xf32> to vector<1x1xf32>
      %cst_84 = arith.constant dense<0.000000e+00> : vector<1xf32>
      %211 = vector.multi_reduction <add>, %210, %cst_84 [0] : vector<1x1xf32> to vector<1xf32>
      %212 = vector.shape_cast %211 : vector<1xf32> to vector<1x1xf32>
      %213 = vector.broadcast %205 : f32 to vector<1x1xf32>
      %214 = arith.mulf %213, %212 : vector<1x1xf32>
      %215 = tpu.iota {dimensions = array<i32: 1>} : vector<1x128xi32>
      %c0_i32_85 = arith.constant 0 : i32
      %216 = vector.broadcast %c0_i32_85 : i32 to vector<1x128xi32>
      %217 = arith.cmpi eq, %215, %216 : vector<1x128xi32>
      %cst_86 = arith.constant 0.000000e+00 : f32
      %218 = vector.broadcast %cst_86 : f32 to vector<1x128xf32>
      %219 = vector.shape_cast %108 : vector<1x1xf32> to vector<1x1xf32>
      %220 = vector.broadcast %219 : vector<1x1xf32> to vector<1x128xf32>
      %221 = arith.select %217, %220, %218 : vector<1x128xi1>, vector<1x128xf32>
      %c1_i32 = arith.constant 1 : i32
      %222 = vector.broadcast %c1_i32 : i32 to vector<1x128xi32>
      %223 = arith.cmpi eq, %215, %222 : vector<1x128xi32>
      %224 = vector.shape_cast %142 : vector<1x1xf32> to vector<1x1xf32>
      %225 = vector.broadcast %224 : vector<1x1xf32> to vector<1x128xf32>
      %226 = arith.select %223, %225, %221 : vector<1x128xi1>, vector<1x128xf32>
      %c2_i32 = arith.constant 2 : i32
      %227 = vector.broadcast %c2_i32 : i32 to vector<1x128xi32>
      %228 = arith.cmpi eq, %215, %227 : vector<1x128xi32>
      %229 = vector.shape_cast %214 : vector<1x1xf32> to vector<1x1xf32>
      %230 = vector.broadcast %229 : vector<1x1xf32> to vector<1x128xf32>
      %231 = arith.select %228, %230, %226 : vector<1x128xi1>, vector<1x128xf32>
      %c5_i32 = arith.constant 5 : i32
      %232 = vector.broadcast %c5_i32 : i32 to vector<1x128xi32>
      %233 = arith.cmpi eq, %215, %232 : vector<1x128xi32>
      %234 = arith.addf %108, %142 : vector<1x1xf32>
      %235 = arith.addf %234, %214 : vector<1x1xf32>
      %236 = vector.shape_cast %235 : vector<1x1xf32> to vector<1x1xf32>
      %237 = vector.broadcast %236 : vector<1x1xf32> to vector<1x128xf32>
      %238 = arith.select %233, %237, %231 : vector<1x128xi1>, vector<1x128xf32>
      %c0_87 = arith.constant 0 : index
      %c0_88 = arith.constant 0 : index
      %239 = vector.load %arg8[%c0_87, %c0_88] : memref<1x128xf32, #tpu.memory_space<vmem>>, vector<1x128xf32>
      tpu.vector_store %arg8[%c0_87, %c0_88], %238 {strides = array<i32>} : memref<1x128xf32, #tpu.memory_space<vmem>>, vector<1x128xf32>,
    } else {
    }
    %c0 = arith.constant 0 : index
    %c0_2 = arith.constant 0 : index
    %4 = vector.load %arg5[%c0, %c0_2] : memref<8x256xbf16, #tpu.memory_space<vmem>>, vector<8x256xbf16>
    %5 = arith.extf %4 : vector<8x256xbf16> to vector<8x256xf32>
    %c0_3 = arith.constant 0 : index
    %c0_4 = arith.constant 0 : index
    %6 = vector.load %arg6[%c0_3, %c0_4] : memref<8x256xi8, #tpu.memory_space<vmem>>, vector<8x256xi8>
    %7 = arith.sitofp %6 : vector<8x256xi8> to vector<8x256xf32>
    %8 = math.absf %5 : vector<8x256xf32>
    %cst = arith.constant 0.000000e+00 : f32
    %9 = vector.broadcast %cst : f32 to vector<8x256xf32>
    %10 = arith.subf %9, %8 : vector<8x256xf32>
    %11 = math.exp %10 : vector<8x256xf32>
    %cst_5 = arith.constant 1.000000e+00 : f32
    %12 = vector.broadcast %cst_5 : f32 to vector<8x256xf32>
    %13 = arith.addf %12, %11 : vector<8x256xf32>
    %14 = tpu.reciprocal %13 {approx = true} : vector<8x256xf32> -> vector<8x256xf32>
    %cst_6 = arith.constant 0.000000e+00 : f32
    %15 = vector.broadcast %cst_6 : f32 to vector<8x256xf32>
    %16 = arith.cmpf oge, %5, %15 : vector<8x256xf32>
    %cst_7 = arith.constant 1.000000e+00 : f32
    %17 = vector.broadcast %cst_7 : f32 to vector<8x256xf32>
    %18 = arith.select %16, %17, %11 : vector<8x256xi1>, vector<8x256xf32>
    %19 = arith.mulf %18, %14 : vector<8x256xf32>
    %cst_8 = arith.constant 0.000000e+00 : f32
    %20 = vector.broadcast %cst_8 : f32 to vector<8x256xf32>
    %21 = arith.maximumf %5, %20 : vector<8x256xf32>
    %22 = math.log %13 : vector<8x256xf32>
    %23 = arith.addf %21, %22 : vector<8x256xf32>
    %24 = arith.mulf %5, %7 : vector<8x256xf32>
    %25 = arith.subf %23, %24 : vector<8x256xf32>
    %26 = arith.mulf %19, %7 : vector<8x256xf32>
    %27 = arith.addf %19, %7 : vector<8x256xf32>
    %cst_9 = arith.constant 2.000000e+00 : f32
    %28 = vector.broadcast %cst_9 : f32 to vector<8x256xf32>
    %29 = arith.mulf %28, %26 : vector<8x256xf32>
    %30 = arith.subf %27, %29 : vector<8x256xf32>
    %cst_10 = arith.constant 5.000000e-01 : f32
    %31 = vector.broadcast %cst_10 : f32 to vector<8x256xf32>
    %32 = arith.mulf %31, %7 : vector<8x256xf32>
    %cst_11 = arith.constant 7.500000e-01 : f32
    %33 = vector.broadcast %cst_11 : f32 to vector<8x256xf32>
    %34 = arith.subf %33, %32 : vector<8x256xf32>
    %35 = arith.mulf %34, %25 : vector<8x256xf32>
    %36 = arith.mulf %35, %30 : vector<8x256xf32>
    %37 = arith.mulf %36, %30 : vector<8x256xf32>
    %c0_12 = arith.constant 0 : index
    %c0_13 = arith.constant 0 : index
    %38 = vector.load %arg9[%c0_12, %c0_13] : memref<8x1xf32, #tpu.memory_space<vmem>>, vector<8x1xf32>
    %cst_14 = arith.constant dense<0.000000e+00> : vector<8xf32>
    %39 = vector.multi_reduction <add>, %37, %cst_14 [1] : vector<8x256xf32> to vector<8xf32>
    %40 = vector.shape_cast %39 : vector<8xf32> to vector<8x1xf32>
    %41 = arith.addf %38, %40 : vector<8x1xf32>
    %c0_15 = arith.constant 0 : index
    %c0_16 = arith.constant 0 : index
    %42 = vector.load %arg9[%c0_15, %c0_16] : memref<8x1xf32, #tpu.memory_space<vmem>>, vector<8x1xf32>
    tpu.vector_store %arg9[%c0_15, %c0_16], %41 {strides = array<i32>} : memref<8x1xf32, #tpu.memory_space<vmem>>, vector<8x1xf32>,
    %c0_17 = arith.constant 0 : index
    %c0_18 = arith.constant 0 : index
    %43 = vector.load %arg10[%c0_17, %c0_18] : memref<8x1xf32, #tpu.memory_space<vmem>>, vector<8x1xf32>
    %cst_19 = arith.constant dense<0.000000e+00> : vector<8xf32>
    %44 = vector.multi_reduction <add>, %26, %cst_19 [1] : vector<8x256xf32> to vector<8xf32>
    %45 = vector.shape_cast %44 : vector<8xf32> to vector<8x1xf32>
    %46 = arith.addf %43, %45 : vector<8x1xf32>
    %c0_20 = arith.constant 0 : index
    %c0_21 = arith.constant 0 : index
    %47 = vector.load %arg10[%c0_20, %c0_21] : memref<8x1xf32, #tpu.memory_space<vmem>>, vector<8x1xf32>
    tpu.vector_store %arg10[%c0_20, %c0_21], %46 {strides = array<i32>} : memref<8x1xf32, #tpu.memory_space<vmem>>, vector<8x1xf32>,
    %c0_22 = arith.constant 0 : index
    %c0_23 = arith.constant 0 : index
    %48 = vector.load %arg11[%c0_22, %c0_23] : memref<8x1xf32, #tpu.memory_space<vmem>>, vector<8x1xf32>
    %cst_24 = arith.constant dense<0.000000e+00> : vector<8xf32>
    %49 = vector.multi_reduction <add>, %19, %cst_24 [1] : vector<8x256xf32> to vector<8xf32>
    %50 = vector.shape_cast %49 : vector<8xf32> to vector<8x1xf32>
    %51 = arith.addf %48, %50 : vector<8x1xf32>
    %c0_25 = arith.constant 0 : index
    %c0_26 = arith.constant 0 : index
    %52 = vector.load %arg11[%c0_25, %c0_26] : memref<8x1xf32, #tpu.memory_space<vmem>>, vector<8x1xf32>
    tpu.vector_store %arg11[%c0_25, %c0_26], %51 {strides = array<i32>} : memref<8x1xf32, #tpu.memory_space<vmem>>, vector<8x1xf32>,
    %c0_27 = arith.constant 0 : index
    %c0_28 = arith.constant 0 : index
    %53 = vector.load %arg12[%c0_27, %c0_28] : memref<8x1xf32, #tpu.memory_space<vmem>>, vector<8x1xf32>
    %cst_29 = arith.constant dense<0.000000e+00> : vector<8xf32>
    %54 = vector.multi_reduction <add>, %7, %cst_29 [1] : vector<8x256xf32> to vector<8xf32>
    %55 = vector.shape_cast %54 : vector<8xf32> to vector<8x1xf32>
    %56 = arith.addf %53, %55 : vector<8x1xf32>
    %c0_30 = arith.constant 0 : index
    %c0_31 = arith.constant 0 : index
    %57 = vector.load %arg12[%c0_30, %c0_31] : memref<8x1xf32, #tpu.memory_space<vmem>>, vector<8x1xf32>
    tpu.vector_store %arg12[%c0_30, %c0_31], %56 {strides = array<i32>} : memref<8x1xf32, #tpu.memory_space<vmem>>, vector<8x1xf32>,
    %58 = arith.extui %1 : i1 to i32
    %c0_i32_32 = arith.constant 0 : i32
    %59 = arith.cmpi ne, %58, %c0_i32_32 : i32
    scf.if %59 {
      %c0_33 = arith.constant 0 : index
      %c0_34 = arith.constant 0 : index
      %60 = vector.load %arg8[%c0_33, %c0_34] : memref<1x128xf32, #tpu.memory_space<vmem>>, vector<1x128xf32>
      %c2 = arith.constant 2 : index
      %61 = memref.load %arg1[%c2] : memref<3xi32, #tpu.memory_space<smem>>
      %62 = arith.sitofp %61 : i32 to f32
      %cst_35 = arith.constant 1.000000e+00 : f32
      %63 = arith.maximumf %62, %cst_35 : f32
      %cst_36 = arith.constant 1.000000e+00 : f32
      %64 = arith.divf %cst_36, %63 : f32
      %65 = tpu.iota {dimensions = array<i32: 0>} : vector<8x1xi32>
      %c1 = arith.constant 1 : index
      %66 = memref.load %arg1[%c1] : memref<3xi32, #tpu.memory_space<smem>>
      %67 = vector.broadcast %66 : i32 to vector<8x1xi32>
      %68 = arith.cmpi slt, %65, %67 : vector<8x1xi32>
      %69 = arith.extui %68 : vector<8x1xi1> to vector<8x1xi32>
      %70 = arith.sitofp %69 : vector<8x1xi32> to vector<8x1xf32>
      %c0_37 = arith.constant 0 : index
      %c0_38 = arith.constant 0 : index
      %71 = vector.load %arg9[%c0_37, %c0_38] : memref<8x1xf32, #tpu.memory_space<vmem>>, vector<8x1xf32>
      %72 = arith.mulf %70, %71 : vector<8x1xf32>
      %cst_39 = arith.constant dense<0.000000e+00> : vector<8xf32>
      %73 = vector.multi_reduction <add>, %72, %cst_39 [1] : vector<8x1xf32> to vector<8xf32>
      %74 = vector.shape_cast %73 : vector<8xf32> to vector<8x1xf32>
      %cst_40 = arith.constant dense<0.000000e+00> : vector<1xf32>
      %75 = vector.multi_reduction <add>, %74, %cst_40 [0] : vector<8x1xf32> to vector<1xf32>
      %76 = vector.shape_cast %75 : vector<1xf32> to vector<1x1xf32>
      %cst_41 = arith.constant 3.906250e-03 : f32
      %77 = arith.mulf %cst_41, %64 : f32
      %78 = vector.broadcast %77 : f32 to vector<1x1xf32>
      %79 = arith.mulf %76, %78 : vector<1x1xf32>
      %c0_42 = arith.constant 0 : index
      %c0_43 = arith.constant 0 : index
      %80 = vector.load %arg10[%c0_42, %c0_43] : memref<8x1xf32, #tpu.memory_space<vmem>>, vector<8x1xf32>
      %cst_44 = arith.constant 2.000000e+00 : f32
      %81 = vector.broadcast %cst_44 : f32 to vector<8x1xf32>
      %82 = arith.mulf %81, %80 : vector<8x1xf32>
      %cst_45 = arith.constant 1.000000e+00 : f32
      %83 = vector.broadcast %cst_45 : f32 to vector<8x1xf32>
      %84 = arith.addf %82, %83 : vector<8x1xf32>
      %c0_46 = arith.constant 0 : index
      %c0_47 = arith.constant 0 : index
      %85 = vector.load %arg11[%c0_46, %c0_47] : memref<8x1xf32, #tpu.memory_space<vmem>>, vector<8x1xf32>
      %c0_48 = arith.constant 0 : index
      %c0_49 = arith.constant 0 : index
      %86 = vector.load %arg12[%c0_48, %c0_49] : memref<8x1xf32, #tpu.memory_space<vmem>>, vector<8x1xf32>
      %87 = arith.addf %85, %86 : vector<8x1xf32>
      %cst_50 = arith.constant 1.000000e+00 : f32
      %88 = vector.broadcast %cst_50 : f32 to vector<8x1xf32>
      %89 = arith.addf %87, %88 : vector<8x1xf32>
      %90 = arith.divf %84, %89 : vector<8x1xf32>
      %cst_51 = arith.constant 1.000000e+00 : f32
      %91 = vector.broadcast %cst_51 : f32 to vector<8x1xf32>
      %92 = arith.subf %91, %90 : vector<8x1xf32>
      %93 = arith.mulf %70, %92 : vector<8x1xf32>
      %cst_52 = arith.constant dense<0.000000e+00> : vector<8xf32>
      %94 = vector.multi_reduction <add>, %93, %cst_52 [1] : vector<8x1xf32> to vector<8xf32>
      %95 = vector.shape_cast %94 : vector<8xf32> to vector<8x1xf32>
      %cst_53 = arith.constant dense<0.000000e+00> : vector<1xf32>
      %96 = vector.multi_reduction <add>, %95, %cst_53 [0] : vector<8x1xf32> to vector<1xf32>
      %97 = vector.shape_cast %96 : vector<1xf32> to vector<1x1xf32>
      %98 = vector.broadcast %64 : f32 to vector<1x1xf32>
      %99 = arith.mulf %97, %98 : vector<1x1xf32>
      %100 = tpu.iota {dimensions = array<i32: 1>} : vector<1x128xi32>
      %cst_54 = arith.constant 0.000000e+00 : f32
      %101 = vector.broadcast %cst_54 : f32 to vector<1x128xf32>
      %c3_i32 = arith.constant 3 : i32
      %102 = vector.broadcast %c3_i32 : i32 to vector<1x128xi32>
      %103 = arith.cmpi eq, %100, %102 : vector<1x128xi32>
      %104 = vector.shape_cast %79 : vector<1x1xf32> to vector<1x1xf32>
      %105 = vector.broadcast %104 : vector<1x1xf32> to vector<1x128xf32>
      %106 = arith.select %103, %105, %101 : vector<1x128xi1>, vector<1x128xf32>
      %107 = arith.addf %60, %106 : vector<1x128xf32>
      %c4_i32 = arith.constant 4 : i32
      %108 = vector.broadcast %c4_i32 : i32 to vector<1x128xi32>
      %109 = arith.cmpi eq, %100, %108 : vector<1x128xi32>
      %110 = vector.shape_cast %99 : vector<1x1xf32> to vector<1x1xf32>
      %111 = vector.broadcast %110 : vector<1x1xf32> to vector<1x128xf32>
      %112 = arith.select %109, %111, %101 : vector<1x128xi1>, vector<1x128xf32>
      %113 = arith.addf %107, %112 : vector<1x128xf32>
      %c5_i32 = arith.constant 5 : i32
      %114 = vector.broadcast %c5_i32 : i32 to vector<1x128xi32>
      %115 = arith.cmpi eq, %100, %114 : vector<1x128xi32>
      %116 = arith.addf %79, %99 : vector<1x1xf32>
      %117 = vector.shape_cast %116 : vector<1x1xf32> to vector<1x1xf32>
      %118 = vector.broadcast %117 : vector<1x1xf32> to vector<1x128xf32>
      %119 = arith.select %115, %118, %101 : vector<1x128xi1>, vector<1x128xf32>
      %120 = arith.addf %113, %119 : vector<1x128xf32>
      %c0_55 = arith.constant 0 : index
      %c0_56 = arith.constant 0 : index
      %121 = vector.load %arg7[%c0_55, %c0_56] : memref<1x128xf32, #tpu.memory_space<vmem>>, vector<1x128xf32>
      tpu.vector_store %arg7[%c0_55, %c0_56], %120 {strides = array<i32>} : memref<1x128xf32, #tpu.memory_space<vmem>>, vector<1x128xf32>,
    } else {
    }
    return
  }
  func.func @transform_0(%arg0: i32, %arg1: memref<3xi32, #tpu.memory_space<smem>>) -> (i32, i32) {
    %c0_i32 = arith.constant 0 : i32
    %c0_i32_0 = arith.constant 0 : i32
    %c0_i32_1 = arith.constant 0 : i32
    return %c0_i32, %c0_i32_0 : i32, i32
  }
  func.func @transform_1(%arg0: i32, %arg1: memref<3xi32, #tpu.memory_space<smem>>) -> (i32, i32) {
    %c0_i32 = arith.constant 0 : i32
    %c0_i32_0 = arith.constant 0 : i32
    %c0_i32_1 = arith.constant 0 : i32
    return %c0_i32, %c0_i32_0 : i32, i32
  }
  func.func @transform_2(%arg0: i32, %arg1: memref<3xi32, #tpu.memory_space<smem>>) -> (i32, i32) {
    %c0_i32 = arith.constant 0 : i32
    %c0_i32_0 = arith.constant 0 : i32
    %c0_i32_1 = arith.constant 0 : i32
    return %c0_i32, %c0_i32_0 : i32, i32
  }
  func.func @transform_3(%arg0: i32, %arg1: memref<3xi32, #tpu.memory_space<smem>>) -> (i32, i32) {
    %c0_i32 = arith.constant 0 : i32
    %c0_i32_0 = arith.constant 0 : i32
    return %c0_i32, %arg0 : i32, i32
  }
  func.func @transform_4(%arg0: i32, %arg1: memref<3xi32, #tpu.memory_space<smem>>) -> (i32, i32) {
    %c0_i32 = arith.constant 0 : i32
    %c0_i32_0 = arith.constant 0 : i32
    return %c0_i32, %arg0 : i32, i32
  }
  func.func @transform_5(%arg0: i32, %arg1: memref<3xi32, #tpu.memory_space<smem>>) -> (i32, i32) {
    %c0_i32 = arith.constant 0 : i32
    %c0_i32_0 = arith.constant 0 : i32
    %c0_i32_1 = arith.constant 0 : i32
    return %c0_i32, %c0_i32_0 : i32, i32
  }
}

</mosaic_0001>

<bundles_post_ra>
// kernel: tpu_custom_call.1
= control target key start
LH: loop header
LB: loop body
LE: loop exit
PB: predicated region body
PF: predicated region fallthrough
CT: control target
= control target key end

     0   :  { %s722_s0 = inlined_call_operand.hbm [shape: s32[3], index: 0, kind: input, shape index: {}]   ;;  %s723_s1 = inlined_call_operand.hbm [shape: f32[5,16], index: 1, kind: input, shape index: {}]   ;;  %s724_s2 = inlined_call_operand.vmem [shape: s32[1,16], index: 2, kind: input, shape index: {}]   ;;  %s725_s3 = inlined_call_operand.vmem [shape: f32[8,128], index: 3, kind: input, shape index: {}]   ;;  %s726_s4 = inlined_call_operand.hbm [shape: bf16[8,256], index: 4, kind: input, shape index: {}]   ;;  %s727_s5 = inlined_call_operand.vmem [shape: s8[8,256], index: 5, kind: input, shape index: {}]   ;;  %s728_s6 = inlined_call_operand.hbm [shape: f32[1,128], index: 6, kind: output, shape index: {}]  }
   0x1   :  { %s440_s23 = scalar_lea.hbm %s722_s0, 16 }
   0x2   :  { %p441_p0 = scmp.ne.s32.totalorder %s722_s0, %s440_s23  ;;  %p444_p1 = scmp.lt.u32.totalorder %s440_s23, %s722_s0 }
   0x4   :  { %p446_p2 = pnand %p444_p1, %p441_p0 }
   0x6   :  { %449 = shalt.err (!%p446_p2)  }
   0x7   :  { %s524_s28 = smov [#allocation8]  }
   0x8   :  { %12 = dma.hbm_to_smem %s722_s0, 16, %s524_s28, [#allocation7] }
   0x9   :  { %516 = dma.done.wait [#allocation7], 16 }
   0xa   :  { %517 = vsyncadd [#allocation7], 4294967280 }
   0xb   :  { %14 = sfence }
   0xc   :  { %15 = vsyncpa [#allocation10], 0 }
   0xd   :  { %16 = vsyncpa [#allocation13], 0 }
   0xe   :  { %17 = vsyncpa [#allocation11], 0  ;;  %s525_s7 = smov [#allocation9]   ;;  %s526_s9 = smov [#allocation12]  }
   0xf   :  { %s24_s8 = sshll.u32 %s525_s7, 4  ;;  %s38_s10 = sshll.u32 %s526_s9, 4  ;;  %s25_s8 = int_to_ptr.vmem [resolvable:$true] %s24_s8  ;;  %s39_s10 = int_to_ptr.vmem [resolvable:$true] %s38_s10 }
  0x10   :  { %s450_s13 = scalar_lea.hbm %s723_s1, 128 }
  0x11   :  { %p451_p3 = scmp.ne.s32.totalorder %s723_s1, %s450_s13  ;;  %p454_p4 = scmp.lt.u32.totalorder %s450_s13, %s723_s1 }
  0x13   :  { %p456_p5 = pnand %p454_p4, %p451_p3 }
  0x15   :  { %459 = shalt.err (!%p456_p5)
}
  0x16   :  { %s460_s17 = scalar_lea.vmem %s25_s8, 128  ;;  %p465_p7 = scmp.lt.s32.totalorder %s25_s8, %s25_s8 }
  0x17   :  { %p461_p6 = scmp.ne.s32.totalorder %s25_s8, %s460_s17  ;;  %p466_p8 = scmp.lt.s32.totalorder %s460_s17, %s460_s17 }
  0x19   :  { %p467_p9 = por %p466_p8, %p465_p7 }
  0x1b   :  { %p468_p10 = pnand %p467_p9, %p461_p6 }
  0x1d   :  { %471 = shalt.err (!%p468_p10)
}
  0x1e   :  { %27 = dma.hbm_to_vmem [thread:$0]  %s723_s1, 128, %s25_s8, [#allocation10]  }
  0x1f   :  { %s472_s22 = scalar_lea.hbm %s726_s4, 128 }
  0x20   :  { %p473_p11 = scmp.ne.s32.totalorder %s726_s4, %s472_s22  ;;  %p476_p12 = scmp.lt.u32.totalorder %s472_s22, %s726_s4 }
  0x22   :  { %p478_p13 = pnand %p476_p12, %p473_p11 }
  0x24   :  { %481 = shalt.err (!%p478_p13)
}
  0x25   :  { %s482_s27 = scalar_lea.vmem %s39_s10, 128  ;;  %p487_p1 = scmp.lt.s32.totalorder %s39_s10, %s39_s10 }
  0x26   :  { %p483_p0 = scmp.ne.s32.totalorder %s39_s10, %s482_s27  ;;  %p488_p2 = scmp.lt.s32.totalorder %s482_s27, %s482_s27 }
  0x28   :  { %p489_p3 = por %p488_p2, %p487_p1 }
  0x2a   :  { %p490_p4 = pnand %p489_p3, %p483_p0 }
  0x2c   :  { %493 = shalt.err (!%p490_p4)
}
  0x2d   :  { %41 = dma.hbm_to_vmem [thread:$0]  %s726_s4, 128, %s39_s10, [#allocation13]  }
  0x2e   :  { %518 = dma.done.wait [#allocation10], 128  }
  0x2f   :  { %519 = vsyncadd [#allocation10], 4294967168 }
  0x30   :  { %520 = dma.done.wait [#allocation13], 128  }
  0x31   :  { %521 = vsyncadd [#allocation13], 4294967168  ;;  %vm54_vm0 = vcmask 7168   ;;  %s394_s29 = sld [smem:[#allocation8 + $0x2]]  ;;  %v527_v0 = vmov 0.0   ;;  %v218_v1 = vld [vmem:[#allocation12] sm:$0xff]  ;;  %v88_v15 = vlaneseq }
  0x32   :  { %57 = vst.msk [vmem:[#allocation5] sm:$0xff] %vm54_vm0, %v527_v0  ;;  %55 = vst.msk [vmem:[#allocation3] sm:$0xff] %vm54_vm0, %v527_v0  ;;  %vm67_vm1 = vcmask 126976   ;;  %v611_v2 = vunpack.c.l.bf16 %v218_v1  ;;  %v613_v3 = vunpack.c.h.bf16 %v218_v1  ;;  %v615_v4 = vld [vmem:[#allocation9] sm:$0x1f]  ;;  %v120_v10 = vld [vmem:[%s725_s3] sm:$0xff] }
  0x33   :  { %56 = vst.msk [vmem:[#allocation4] sm:$0xff] %vm54_vm0, %v527_v0  ;;  %58 = vst.msk [vmem:[#allocation6] sm:$0xff] %vm54_vm0, %v527_v0  ;;  %v68_v7 = vsel %vm67_vm1, %v615_v4, -inf  ;;  %v152_v14 = vmul.f32 0.5, %v120_v10  ;;  %s528_s8 = smov 1.0   ;;  %v624_v22 = vshrl.u32 %v88_v15, 7 }
  0x34   :  { %v226_v5 = vand.u32 2147483647, %v611_v2  ;;  %v227_v6 = vand.u32 2147483647, %v613_v3  ;;  %v69_v11 = vrot.slane %v68_v7, 4  ;;  %v129_v23 = vrot.slane %v120_v10, 4 }
  0x35   :  { %v154_v16 = vrot.slane %v152_v14, 2  ;;  %v221_v28 = vld [vmem:[%s727_s5] sm:$0xf]  ;;  %v92_v33 = vsub.s32 0, %v624_v22  ;;  %s637_s5 = sld [smem:[#allocation8]]  ;;  %vm238_vm3 = vcmp.ge.f32.partialorder %v611_v2, 0.0 }
  0x36   :  { %v228_v8 = vsub.f32 0.0, %v226_v5  ;;  %v229_v9 = vsub.f32 0.0, %v227_v6  ;;  %v70_v17 = vmax.f32 %v68_v7, %v69_v11  ;;  %v131_v35 = vsub.f32 %v120_v10, %v129_v23  ;;  %v633_v37 = vld [vmem:[%s724_s2] sm:$0x1]  ;;  %s398_s2 = sld [smem:[#allocation8 + $0x1]]  ;;  %s531_s17 = smov [#allocation14]  }
  0x37   :  { %s60_s4 = scvt.s32.f32 %s394_s29  ;;  %v156_v19 = vsub.f32 %v120_v10, %v154_v16  ;;  %v157_v20 = vadd.f32 %v154_v16, %v120_v10  ;;  %v222_v41 = vunpack.c.0.s8 %v221_v28  ;;  %v223_v46 = vunpack.c.1.s8 %v221_v28  ;;  %s384_s18 = sshll.u32 %s531_s17, 4  ;;  %s385_s18 = int_to_ptr.vmem [resolvable:$true] %s384_s18 }
  0x38   :  { %v230_v12 = vmul.f32 1.442695, %v228_v8  ;;  %v232_v13 = vmul.f32 1.442695, %v229_v9  ;;  %v71_v21 = vrot.slane %v70_v17, 2  ;;  %v93_v50 = vrot.slane %v633_v37, %v92_v33  ;;  %s494_s19 = scalar_lea.vmem %s385_s18, 16  ;;  %p499_p6 = scmp.lt.s32.totalorder %s385_s18, %s385_s18 }
  0x39   :  { %s61_s9 = smax.f32 %s528_s8, %s60_s4  ;;  %v158_v24 = vsub.f32 %v157_v20, %v156_v19  ;;  %v164_v25 = vrot.slane %v156_v19, 4  ;;  %v168_v26 = vrot.slane %v157_v20, 4  ;;  %v640_v52 = vand.u32 2147483647, %v131_v35  ;;  %p495_p5 = scmp.ne.s32.totalorder %s385_s18, %s494_s19 }
  0x3a   :  { %414 = vpow2.f32 %v230_v12  ;;  %v62_v18 = vstv %s61_s9  ;;  %v72_v27 = vmax.f32 %v70_v17, %v71_v21  ;;  %v224_v60 = vcvt.s32.f32 %v222_v41  ;;  %s498_s20 = scalar_lea.vmem %s385_s18, 32 }
  0x3b   :  { %416 = vpow2.f32 %v232_v13  ;;  %v160_v29 = vrot.slane %v158_v24, 1  ;;  %v166_v30 = vmax.f32 %v156_v19, %v164_v25  ;;  %v170_v31 = vmin.f32 %v157_v20, %v168_v26  ;;  %p500_p7 = scmp.lt.s32.totalorder %s498_s20, %s494_s19 }
  0x3c   :  { %418 = vrcp.f32 %v62_v18  ;;  %v185_v32 = vmin.f32 %v156_v19, %v164_v25  ;;  %v186_v34 = vmax.f32 %v157_v20, %v168_v26  ;;  %v73_v36 = vrot.slane %v72_v27, 1 }
  0x3d   :  { %v162_v38 = vmul.f32 %v160_v29, %v158_v24  ;;  %v171_v39 = vsub.f32 %v170_v31, %v166_v30  ;;  %v225_v61 = vcvt.s32.f32 %v223_v46  ;;  %vm94_vm2 = vcmp.eq.s32.totalorder %v624_v22, %v93_v50  ;;  %p501_p8 = por %p500_p7, %p499_p6 }
  0x3e   :  { %v187_v42 = vsub.f32 %v186_v34, %v185_v32  ;;  %v635_v43 = vmax.f32 %v72_v27, %v73_v36  ;;  %v134_v1 = vrot.slane %v640_v52, 1  ;;  %v654_v5 = vand.u32 127, %v88_v15 }
  0x3f   :  { %v172_v47 = vmax.f32 %v171_v39, 0.0  ;;  %v178_v48 = vrot.slane %v162_v38, 4  ;;  %vm239_vm4 = vcmp.ge.f32.partialorder %v613_v3, 0.0  ;;  %v124_v7 = vstv %s637_s5  ;;  %p502_p9 = pnand %p501_p8, %p495_p5 }
  0x40   :  { %v188_v51 = vmax.f32 %v187_v42, 0.0  ;;  %v75_v55 = vsub.f32 %v615_v4, %v635_v43  ;;  %v264_v9 = vmul.f32 0.5, %v224_v60  ;;  %v265_v10 = vmul.f32 0.5, %v225_v61 }
  0x41   :  { %v174_v53 = vrot.slane %v172_v47, 1  ;;  %v180_v54 = vadd.f32 %v178_v48, %v162_v38  ;;  %v395_v11 = vsel %vm94_vm2, 1.0, %v527_v0  ;;  %v136_v13 = vadd.f32 %v134_v1, %v640_v52 }
  0x42   :  { %v190_v57 = vrot.slane %v188_v51, 1  ;;  %v76_v59 = vmul.f32 1.442695, %v75_v55  ;;  %v137_v14 = vrot.slane %v640_v52, 2  ;;  %vm106_vm5 = vcmp.eq.s32.totalorder %v633_v37, 4 }
  0x43   :  { %v644_v58 = vmul.f32 %v174_v53, %v172_v47  ;;  %vm665_vm6 = vcmp.lt.s32.totalorder %v654_v5, %v124_v7  ;;  %v294_v18 = vadd.f32 %v225_v61, %v224_v60  ;;  %v244_v19 = vmax.f32 %v611_v2, 0.0 }
  0x44   :  { %v415_v40 = vpop.eup %414  ;;  %v646_v62 = vmul.f32 %v190_v57, %v188_v51  ;;  %v245_v20 = vmax.f32 %v613_v3, 0.0  ;;  %v252_v21 = vmul.f32 %v224_v60, %v611_v2  ;;  %vm109_vm7 = vcmask 122880  }
  0x45   :  { %v417_v44 = vpop.eup %416  ;;  %v234_v45 = vadd.f32 1.0, %v415_v40  ;;  %v650_v63 = vsub.f32 %v180_v54, %v644_v58  ;;  %v240_v12 = vsel %vm238_vm3, 1.0, %v415_v40  ;;  %v253_v25 = vmul.f32 %v225_v61, %v613_v3 }
  0x46   :  { %v235_v49 = vadd.f32 1.0, %v417_v44  ;;  %v419_v56 = vpop.eup %418  ;;  %v194_v6 = vadd.f32 1e-07, %v646_v62  ;;  %v241_v15 = vsel %vm239_vm4, 1.0, %v417_v44  ;;  %v266_v26 = vsub.f32 0.75, %v264_v9 }
  0x47   :  { %420 = vrcp.f32 %v234_v45  ;;  %400 = vpush %v419_v56  ;;  %v182_v8 = vadd.f32 1e-07, %v650_v63  ;;  %v97_v27 = vmul.f32 %v395_v11, %v615_v4  ;;  %v267_v30 = vsub.f32 0.75, %v265_v10 }
  0x48   :  { %422 = vrcp.f32 %v235_v49  ;;  %402 = vpush %v419_v56  ;;  %v139_v31 = vadd.f32 %v137_v14, %v136_v13  ;;  %v140_v32 = vrot.slane %v640_v52, 3  ;;  %v193_v2 = vsub.f32 %v646_v62, %v650_v63 }
  0x49   :  { %424 = vlog2.f32 %v234_v45  ;;  %v98_v44 = vsel %vm67_vm1, %v97_v27, 0.0  ;;  %v529_v53 = vmov 1.0   ;;  %v396_v7 = vsel %vm665_vm6, 1.0, %v527_v0 }
  0x4a   :  { %426 = vlog2.f32 %v235_v49  ;;  %v107_v54 = vsel %vm106_vm5, 0.1, %v529_v53  ;;  %v142_v55 = vadd.f32 %v140_v32, %v139_v31  ;;  %v99_v63 = vrot.slane %v98_v44, 4 }
  0x4b   :  { %428 = vpow2.f32 %v76_v59  ;;  %v114_v9 = vsel %vm109_vm7, %v107_v54, 0.0  ;;  %vm145_vm8 = vcmask 1040384   ;;  %vm207_vm10 = vcmp.eq.s32.totalorder %v654_v5, 0 }
  0x4c   :  { %430 = vrcp.f32 %v194_v6  ;;  %v144_v11 = vmul.f32 %v396_v7, %v142_v55  ;;  %vm209_vm11 = vcmp.eq.s32.totalorder %v654_v5, 1  ;;  %vm211_vm12 = vcmp.eq.s32.totalorder %v654_v5, 2 }
  0x4d   :  { %432 = vrcp.f32 %v182_v8  ;;  %vm213_vm13 = vcmp.eq.s32.totalorder %v654_v5, 5  ;;  %vm352_vm14 = vcmp.eq.s32.totalorder %v654_v5, 3  ;;  %vm360_vm15 = vcmp.eq.s32.totalorder %v654_v5, 4 }
  0x51   :  { %v421_v17 = vpop.eup %420 }
  0x52   :  { %v423_v23 = vpop.eup %422  ;;  %v242_v24 = vmul.f32 %v421_v17, %v240_v12  ;;  %v100_v17 = vadd.f32 %v99_v63, %v98_v44 }
  0x53   :  { %v425_v28 = vpop.eup %424  ;;  %v243_v29 = vmul.f32 %v423_v23, %v241_v15 }
  0x54   :  { %v427_v33 = vpop.eup %426  ;;  %v256_v34 = vmul.f32 %v242_v24, %v224_v60  ;;  %v247_v35 = vmul.f32 0.6931472, %v425_v28  ;;  %v258_v36 = vadd.f32 %v242_v24, %v224_v60  ;;  %v101_v23 = vrot.slane %v100_v17, 2 }
  0x55   :  { %v429_v38 = vpop.eup %428  ;;  %v288_v39 = vadd.f32 %v243_v29, %v242_v24  ;;  %v257_v40 = vmul.f32 %v243_v29, %v225_v61  ;;  %v249_v3 = vmul.f32 0.6931472, %v427_v33  ;;  %v259_v41 = vadd.f32 %v243_v29, %v225_v61 }
  0x56   :  { %v260_v42 = vmul.f32 2.0, %v256_v34  ;;  %v250_v4 = vadd.f32 %v247_v35, %v244_v19  ;;  %v78_v45 = vsel %vm67_vm1, %v429_v38, 0.0  ;;  %v431_v50 = vpop.eup %430  ;;  %v287_v35 = vld [vmem:[#allocation5] sm:$0xff] }
  0x57   :  { %289 = vadd.xlane.f32.xlu0 %v288_v39  ;;  %v261_v46 = vmul.f32 2.0, %v257_v40  ;;  %v282_v47 = vadd.f32 %v257_v40, %v256_v34  ;;  %v251_v48 = vadd.f32 %v249_v3, %v245_v20  ;;  %v79_v49 = vrot.slane %v78_v45, 4  ;;  %v433_v56 = vpop.eup %432  ;;  %v293_v39 = vld [vmem:[#allocation6] sm:$0xff] }
  0x58   :  { %v254_v51 = vsub.f32 %v250_v4, %v252_v21  ;;  %v262_v52 = vsub.f32 %v258_v36, %v260_v42  ;;  %v196_v60 = vmul.f32 %v431_v50, %v193_v2  ;;  %v184_v1 = vmul.f32 %v433_v56, %v644_v58  ;;  %v281_v2 = vld [vmem:[#allocation4] sm:$0xff] }
  0x59   :  { %283 = vadd.xlane.f32.xlu1 %v282_v47  ;;  %v255_v57 = vsub.f32 %v251_v48, %v253_v25  ;;  %v263_v59 = vsub.f32 %v259_v41, %v261_v46  ;;  %v80_v61 = vadd.f32 %v79_v49, %v78_v45  ;;  %v146_v20 = vsel %vm145_vm8, %v144_v11, 0.0 }
  0x5a   :  { %v268_v62 = vmul.f32 %v266_v26, %v254_v51  ;;  %v197_v10 = vsub.f32 %v184_v1, %v196_v60  ;;  %v102_v25 = vadd.f32 %v101_v23, %v100_v17  ;;  %v530_v34 = vmov 0  }
  0x5b   :  { %295 = vadd.xlane.f32.xlu0 %v294_v18  ;;  %v269_v6 = vmul.f32 %v267_v30, %v255_v57  ;;  %v81_v8 = vrot.slane %v80_v61, 2  ;;  %413 = vset.pattern.permute.xlu1 %v530_v34  ;;  %v312_v45 = vstv %s398_s2 }
  0x5c   :  { %v270_v37 = vmul.f32 %v268_v62, %v262_v52  ;;  %v199_v15 = vsub.f32 1.0, %v197_v10  ;;  %v103_v26 = vrot.slane %v102_v25, 1  ;;  %412 = vset.pattern.permute.xlu0 %v530_v34  ;;  %vm313_vm9 = vcmp.lt.s32.totalorder %v624_v22, %v312_v45 }
  0x5d   :  { %v271_v12 = vmul.f32 %v269_v6, %v263_v59  ;;  %v82_v13 = vadd.f32 %v81_v8, %v80_v61 }
  0x5e   :  { %v272_v14 = vmul.f32 %v270_v37, %v262_v52  ;;  %v200_v18 = vmul.f32 %v396_v7, %v199_v15  ;;  %v104_v29 = vadd.f32 %v103_v26, %v102_v25  ;;  %v399_v52 = vsel %vm313_vm9, 1.0, %v527_v0 }
  0x5f   :  { %v273_v19 = vmul.f32 %v271_v12, %v263_v59  ;;  %115 = vadd.xlane.f32.xlu0 %v114_v9  ;;  %v83_v58 = vrot.slane %v82_v13, 1 }
  0x60   :  { %v201_v24 = vsel %vm145_vm8, %v200_v18, 0.0 }
  0x61   :  { %v275_v21 = vadd.f32 %v273_v19, %v272_v14  ;;  %v84_v16 = vadd.f32 %v83_v58, %v82_v13 }
  0x63   :  { %276 = vadd.xlane.f32.xlu1 %v275_v21  ;;  %147 = vadd.xlane.f32.xlu0 %v146_v20  ;;  %434 = vlog2.f32 %v84_v16 }
  0x67   :  { %202 = vadd.xlane.f32.xlu1 %v201_v24 }
  0x6d   :  { %v435_v27 = vpop.eup %434 }
  0x6e   :  { %v86_v28 = vmul.f32 0.6931472, %v435_v27 }
  0x70   :  { %v87_v30 = vadd.f32 %v86_v28, %v635_v43  ;;  %v274_v43 = vld [vmem:[#allocation3] sm:$0xff] }
  0x72   :  { %v105_v31 = vsub.f32 %v87_v30, %v104_v29 }
  0x74   :  { %v108_v32 = vmul.f32 %v107_v54, %v105_v31 }
  0x76   :  { %v110_v33 = vsel %vm109_vm7, %v108_v32, 0.0 }
  0x77   :  { %111 = vadd.xlane.f32.xlu1 %v110_v33 }
  0x78   :  { %s401_s13 = spop %400 }
  0x79   :  { %s143_s14 = smul.f32 5.0, %s401_s13  ;;  %s695_s0 = spop %402 }
  0x7a   :  { %s198_s15 = smul.f32 2.0, %s401_s13  ;;  %v348_v31 = vstv %s695_s0 }
  0x7b   :  { %v150_v62 = vstv %s143_s14  ;;  %s326_s16 = smul.f32 0.00390625, %s695_s0 }
  0x7c   :  { %v205_v7 = vstv %s198_s15 }
  0x7d   :  { %v327_v15 = vstv %s326_s16 }
  0xe4   :  { %v290_v36 = vpop.xlane.xlu0 %289 }
  0xe5   :  { %v291_v38 = vadd.f32 %v290_v36, %v287_v35 }
  0xe6   :  { %v284_v40 = vpop.xlane.xlu1 %283 }
  0xe7   :  { %292 = vst.msk [vmem:[#allocation5] sm:$0xff] %vm54_vm0, %v291_v38  ;;  %v285_v3 = vadd.f32 %v284_v40, %v281_v2 }
  0xe8   :  { %v296_v41 = vpop.xlane.xlu0 %295 }
  0xe9   :  { %v297_v42 = vadd.f32 %v296_v41, %v293_v39  ;;  %286 = vst.msk [vmem:[#allocation4] sm:$0xff] %vm54_vm0, %v285_v3 }
  0xeb   :  { %298 = vst.msk [vmem:[#allocation6] sm:$0xff] %vm54_vm0, %v297_v42 }
  0xec   :  { %v116_v50 = vpop.xlane.xlu0 %115 }
  0xee   :  { %v332_v46 = vld [vmem:[#allocation5] sm:$0xff] }
  0xf0   :  { %v277_v4 = vpop.xlane.xlu1 %276  ;;  %v329_v51 = vld [vmem:[#allocation4] sm:$0xff]  ;;  %v148_v61 = vpop.xlane.xlu0 %147 }
  0xf1   :  { %v278_v44 = vadd.f32 %v277_v4, %v274_v43  ;;  %v330_v54 = vmul.f32 2.0, %v329_v51  ;;  %v151_v8 = vmul.f32 %v150_v62, %v148_v61 }
  0xf2   :  { %v333_v47 = vld [vmem:[#allocation6] sm:$0xff] }
  0xf3   :  { %280 = vst.msk [vmem:[#allocation3] sm:$0xff] %vm54_vm0, %v278_v44  ;;  %v334_v48 = vadd.f32 %v333_v47, %v332_v46  ;;  %v331_v59 = vadd.f32 1.0, %v330_v54 }
  0xf4   :  { %v203_v60 = vpop.xlane.xlu1 %202 }
  0xf5   :  { %v335_v49 = vadd.f32 1.0, %v334_v48  ;;  %v206_v11 = vmul.f32 %v205_v7, %v203_v60 }
  0xf7   :  { %436 = vrcp.f32 %v335_v49 }
  0xf8   :  { %438 = vrcp.f32 %v116_v50 }
  0xfa   :  { %v316_v53 = vld [vmem:[#allocation3] sm:$0xff] }
  0xfb   :  { %v317_v55 = vmul.f32 %v399_v52, %v316_v53 }
  0xfd   :  { %v319_v56 = vsel %vm54_vm0, %v317_v55, 0.0 }
  0xfe   :  { %v320_v57 = vrot.slane %v319_v56, 4 }
 0x100   :  { %v321_v22 = vadd.f32 %v320_v57, %v319_v56 }
 0x101   :  { %v437_v63 = vpop.eup %436 }
 0x102   :  { %v439_v0 = vpop.eup %438  ;;  %v322_v1 = vrot.slane %v321_v22, 2  ;;  %v337_v6 = vmul.f32 %v437_v63, %v331_v59 }
 0x104   :  { %v323_v37 = vadd.f32 %v322_v1, %v321_v22  ;;  %v338_v9 = vsub.f32 1.0, %v337_v6  ;;  %v112_v10 = vpop.xlane.xlu1 %111 }
 0x105   :  { %v119_v12 = vmul.f32 %v439_v0, %v112_v10 }
 0x106   :  { %v324_v13 = vrot.slane %v323_v37, 1  ;;  %v339_v14 = vmul.f32 %v399_v52, %v338_v9 }
 0x107   :  { %v208_v17 = vsel %vm207_vm10, %v119_v12, 0.0  ;;  %v214_v19 = vadd.f32 %v151_v8, %v119_v12 }
 0x108   :  { %v325_v58 = vadd.f32 %v324_v13, %v323_v37  ;;  %v341_v18 = vsel %vm54_vm0, %v339_v14, 0.0  ;;  %v210_v20 = vsel %vm209_vm11, %v151_v8, %v208_v17 }
 0x109   :  { %v342_v21 = vrot.slane %v341_v18, 4  ;;  %v212_v16 = vsel %vm211_vm12, %v206_v11, %v210_v20  ;;  %v215_v23 = vadd.f32 %v214_v19, %v206_v11 }
 0x10a   :  { %v328_v24 = vmul.f32 %v327_v15, %v325_v58 }
 0x10b   :  { %v343_v25 = vadd.f32 %v342_v21, %v341_v18  ;;  %v216_v26 = vsel %vm213_vm13, %v215_v23, %v212_v16 }
 0x10c   :  { %355 = vperm.xlu0 %412, %v328_v24   ;;  %217 = vst [vmem:[#allocation2] sm:$0x1] %v216_v26 }
 0x10d   :  { %v344_v27 = vrot.slane %v343_v25, 2 }
 0x10f   :  { %v345_v28 = vadd.f32 %v344_v27, %v343_v25 }
 0x111   :  { %v346_v29 = vrot.slane %v345_v28, 1 }
 0x113   :  { %v347_v30 = vadd.f32 %v346_v29, %v345_v28  ;;  %v302_v2 = vld [vmem:[#allocation2] sm:$0x1] }
 0x115   :  { %v349_v32 = vmul.f32 %v348_v31, %v347_v30 }
 0x117   :  { %363 = vperm.xlu1 %413, %v349_v32   ;;  %v369_v33 = vadd.f32 %v349_v32, %v328_v24 }
 0x11b   :  { %372 = vperm.xlu1 %413, %v369_v33  }
 0x18b   :  { %v356_v34 = vpop.permute.xlu0 %355 }
 0x18c   :  { %v358_v35 = vsel %vm352_vm14, %v356_v34, 0.0 }
 0x18d   :  { %v359_v39 = vadd.f32 %v358_v35, %v302_v2 }
 0x196   :  { %v364_v36 = vpop.permute.xlu1 %363 }
 0x197   :  { %v366_v38 = vsel %vm360_vm15, %v364_v36, 0.0 }
 0x198   :  { %v367_v40 = vadd.f32 %v366_v38, %v359_v39 }
 0x19a   :  { %v373_v3 = vpop.permute.xlu1 %372 }
 0x19b   :  { %v375_v41 = vsel %vm213_vm13, %v373_v3, 0.0 }
 0x19c   :  { %v376_v42 = vadd.f32 %v375_v41, %v367_v40 }
 0x19e   :  { %377 = vst [vmem:[#allocation14] sm:$0x1] %v376_v42 }
 0x19f   :  { %505 = shalt.err (!%p502_p9)
}
 0x1a0   :  { %s506_s23 = scalar_lea.hbm %s728_s6, 16 }
 0x1a1   :  { %p507_p10 = scmp.ne.s32.totalorder %s728_s6, %s506_s23  ;;  %p510_p11 = scmp.lt.u32.totalorder %s506_s23, %s728_s6 }
 0x1a3   :  { %p512_p12 = pnand %p510_p11, %p507_p10 }
 0x1a5   :  { %515 = shalt.err (!%p512_p12)
}
 0x1a6   :  { %387 = dma.vmem_to_hbm [thread:$0]  %s385_s18, 16, %s728_s6, [#allocation11]  }
 0x1a7   :  { %522 = dma.done.wait [#allocation11], 16  }
 0x1a8   :  { %523 = vsyncadd [#allocation11], 4294967280 }
 0x1a9   :  { %391 = vsyncpa [#allocation10], 1 }
 0x1aa   :  { %392 = vsyncpa [#allocation13], 1 }
 0x1ab   :  { %393 = vsyncpa [#allocation11], 1 }

// kernel: tpu_custom_call.1
= control target key start
LH: loop header
LB: loop body
LE: loop exit
PB: predicated region body
PF: predicated region fallthrough
CT: control target
= control target key end

     0   :  { %s722_s0 = inlined_call_operand.hbm [shape: s32[3], index: 0, kind: input, shape index: {}]   ;;  %s723_s1 = inlined_call_operand.hbm [shape: f32[5,16], index: 1, kind: input, shape index: {}]   ;;  %s724_s2 = inlined_call_operand.vmem [shape: s32[1,16], index: 2, kind: input, shape index: {}]   ;;  %s725_s3 = inlined_call_operand.vmem [shape: f32[8,128], index: 3, kind: input, shape index: {}]   ;;  %s726_s4 = inlined_call_operand.hbm [shape: bf16[8,256], index: 4, kind: input, shape index: {}]   ;;  %s727_s5 = inlined_call_operand.vmem [shape: s8[8,256], index: 5, kind: input, shape index: {}]   ;;  %s728_s6 = inlined_call_operand.hbm [shape: f32[1,128], index: 6, kind: output, shape index: {}]  }
   0x1   :  { %s440_s23 = scalar_lea.hbm %s722_s0, 16 }
   0x2   :  { %p441_p0 = scmp.ne.s32.totalorder %s722_s0, %s440_s23  ;;  %p444_p1 = scmp.lt.u32.totalorder %s440_s23, %s722_s0 }
   0x4   :  { %p446_p2 = pnand %p444_p1, %p441_p0 }
   0x6   :  { %449 = shalt.err (!%p446_p2)  }
   0x7   :  { %s524_s28 = smov [#allocation8]  }
   0x8   :  { %12 = dma.hbm_to_smem %s722_s0, 16, %s524_s28, [#allocation7] }
   0x9   :  { %516 = dma.done.wait [#allocation7], 16 }
   0xa   :  { %517 = vsyncadd [#allocation7], 4294967280 }
   0xb   :  { %14 = sfence }
   0xc   :  { %15 = vsyncpa [#allocation10], 0 }
   0xd   :  { %16 = vsyncpa [#allocation13], 0 }
   0xe   :  { %17 = vsyncpa [#allocation11], 0  ;;  %s525_s7 = smov [#allocation9]   ;;  %s526_s9 = smov [#allocation12]  }
   0xf   :  { %s24_s8 = sshll.u32 %s525_s7, 4  ;;  %s38_s10 = sshll.u32 %s526_s9, 4  ;;  %s25_s8 = int_to_ptr.vmem [resolvable:$true] %s24_s8  ;;  %s39_s10 = int_to_ptr.vmem [resolvable:$true] %s38_s10 }
  0x10   :  { %s450_s13 = scalar_lea.hbm %s723_s1, 128 }
  0x11   :  { %p451_p3 = scmp.ne.s32.totalorder %s723_s1, %s450_s13  ;;  %p454_p4 = scmp.lt.u32.totalorder %s450_s13, %s723_s1 }
  0x13   :  { %p456_p5 = pnand %p454_p4, %p451_p3 }
  0x15   :  { %459 = shalt.err (!%p456_p5)
}
  0x16   :  { %s460_s17 = scalar_lea.vmem %s25_s8, 128  ;;  %p465_p7 = scmp.lt.s32.totalorder %s25_s8, %s25_s8 }
  0x17   :  { %p461_p6 = scmp.ne.s32.totalorder %s25_s8, %s460_s17  ;;  %p466_p8 = scmp.lt.s32.totalorder %s460_s17, %s460_s17 }
  0x19   :  { %p467_p9 = por %p466_p8, %p465_p7 }
  0x1b   :  { %p468_p10 = pnand %p467_p9, %p461_p6 }
  0x1d   :  { %471 = shalt.err (!%p468_p10)
}
  0x1e   :  { %27 = dma.hbm_to_vmem [thread:$0]  %s723_s1, 128, %s25_s8, [#allocation10]  }
  0x1f   :  { %s472_s22 = scalar_lea.hbm %s726_s4, 128 }
  0x20   :  { %p473_p11 = scmp.ne.s32.totalorder %s726_s4, %s472_s22  ;;  %p476_p12 = scmp.lt.u32.totalorder %s472_s22, %s726_s4 }
  0x22   :  { %p478_p13 = pnand %p476_p12, %p473_p11 }
  0x24   :  { %481 = shalt.err (!%p478_p13)
}
  0x25   :  { %s482_s27 = scalar_lea.vmem %s39_s10, 128  ;;  %p487_p1 = scmp.lt.s32.totalorder %s39_s10, %s39_s10 }
  0x26   :  { %p483_p0 = scmp.ne.s32.totalorder %s39_s10, %s482_s27  ;;  %p488_p2 = scmp.lt.s32.totalorder %s482_s27, %s482_s27 }
  0x28   :  { %p489_p3 = por %p488_p2, %p487_p1 }
  0x2a   :  { %p490_p4 = pnand %p489_p3, %p483_p0 }
  0x2c   :  { %493 = shalt.err (!%p490_p4)
}
  0x2d   :  { %41 = dma.hbm_to_vmem [thread:$0]  %s726_s4, 128, %s39_s10, [#allocation13]  }
  0x2e   :  { %518 = dma.done.wait [#allocation10], 128  }
  0x2f   :  { %519 = vsyncadd [#allocation10], 4294967168 }
  0x30   :  { %520 = dma.done.wait [#allocation13], 128  }
  0x31   :  { %521 = vsyncadd [#allocation13], 4294967168  ;;  %vm54_vm0 = vcmask 7168   ;;  %s394_s29 = sld [smem:[#allocation8 + $0x2]]  ;;  %v527_v0 = vmov 0.0   ;;  %v218_v1 = vld [vmem:[#allocation12] sm:$0xff]  ;;  %v88_v15 = vlaneseq }
  0x32   :  { %57 = vst.msk [vmem:[#allocation5] sm:$0xff] %vm54_vm0, %v527_v0  ;;  %55 = vst.msk [vmem:[#allocation3] sm:$0xff] %vm54_vm0, %v527_v0  ;;  %vm67_vm1 = vcmask 126976   ;;  %v611_v2 = vunpack.c.l.bf16 %v218_v1  ;;  %v613_v3 = vunpack.c.h.bf16 %v218_v1  ;;  %v615_v4 = vld [vmem:[#allocation9] sm:$0x1f]  ;;  %v120_v10 = vld [vmem:[%s725_s3] sm:$0xff] }
  0x33   :  { %56 = vst.msk [vmem:[#allocation4] sm:$0xff] %vm54_vm0, %v527_v0  ;;  %58 = vst.msk [vmem:[#allocation6] sm:$0xff] %vm54_vm0, %v527_v0  ;;  %v68_v7 = vsel %vm67_vm1, %v615_v4, -inf  ;;  %v152_v14 = vmul.f32 0.5, %v120_v10  ;;  %s528_s8 = smov 1.0   ;;  %v624_v22 = vshrl.u32 %v88_v15, 7 }
  0x34   :  { %v226_v5 = vand.u32 2147483647, %v611_v2  ;;  %v227_v6 = vand.u32 2147483647, %v613_v3  ;;  %v69_v11 = vrot.slane %v68_v7, 4  ;;  %v129_v23 = vrot.slane %v120_v10, 4 }
  0x35   :  { %v154_v16 = vrot.slane %v152_v14, 2  ;;  %v221_v28 = vld [vmem:[%s727_s5] sm:$0xf]  ;;  %v92_v33 = vsub.s32 0, %v624_v22  ;;  %s637_s5 = sld [smem:[#allocation8]]  ;;  %vm238_vm3 = vcmp.ge.f32.partialorder %v611_v2, 0.0 }
  0x36   :  { %v228_v8 = vsub.f32 0.0, %v226_v5  ;;  %v229_v9 = vsub.f32 0.0, %v227_v6  ;;  %v70_v17 = vmax.f32 %v68_v7, %v69_v11  ;;  %v131_v35 = vsub.f32 %v120_v10, %v129_v23  ;;  %v633_v37 = vld [vmem:[%s724_s2] sm:$0x1]  ;;  %s398_s2 = sld [smem:[#allocation8 + $0x1]]  ;;  %s531_s17 = smov [#allocation14]  }
  0x37   :  { %s60_s4 = scvt.s32.f32 %s394_s29  ;;  %v156_v19 = vsub.f32 %v120_v10, %v154_v16  ;;  %v157_v20 = vadd.f32 %v154_v16, %v120_v10  ;;  %v222_v41 = vunpack.c.0.s8 %v221_v28  ;;  %v223_v46 = vunpack.c.1.s8 %v221_v28  ;;  %s384_s18 = sshll.u32 %s531_s17, 4  ;;  %s385_s18 = int_to_ptr.vmem [resolvable:$true] %s384_s18 }
  0x38   :  { %v230_v12 = vmul.f32 1.442695, %v228_v8  ;;  %v232_v13 = vmul.f32 1.442695, %v229_v9  ;;  %v71_v21 = vrot.slane %v70_v17, 2  ;;  %v93_v50 = vrot.slane %v633_v37, %v92_v33  ;;  %s494_s19 = scalar_lea.vmem %s385_s18, 16  ;;  %p499_p6 = scmp.lt.s32.totalorder %s385_s18, %s385_s18 }
  0x39   :  { %s61_s9 = smax.f32 %s528_s8, %s60_s4  ;;  %v158_v24 = vsub.f32 %v157_v20, %v156_v19  ;;  %v164_v25 = vrot.slane %v156_v19, 4  ;;  %v168_v26 = vrot.slane %v157_v20, 4  ;;  %v640_v52 = vand.u32 2147483647, %v131_v35  ;;  %p495_p5 = scmp.ne.s32.totalorder %s385_s18, %s494_s19 }
  0x3a   :  { %414 = vpow2.f32 %v230_v12  ;;  %v62_v18 = vstv %s61_s9  ;;  %v72_v27 = vmax.f32 %v70_v17, %v71_v21  ;;  %v224_v60 = vcvt.s32.f32 %v222_v41  ;;  %s498_s20 = scalar_lea.vmem %s385_s18, 32 }
  0x3b   :  { %416 = vpow2.f32 %v232_v13  ;;  %v160_v29 = vrot.slane %v158_v24, 1  ;;  %v166_v30 = vmax.f32 %v156_v19, %v164_v25  ;;  %v170_v31 = vmin.f32 %v157_v20, %v168_v26  ;;  %p500_p7 = scmp.lt.s32.totalorder %s498_s20, %s494_s19 }
  0x3c   :  { %418 = vrcp.f32 %v62_v18  ;;  %v185_v32 = vmin.f32 %v156_v19, %v164_v25  ;;  %v186_v34 = vmax.f32 %v157_v20, %v168_v26  ;;  %v73_v36 = vrot.slane %v72_v27, 1 }
  0x3d   :  { %v162_v38 = vmul.f32 %v160_v29, %v158_v24  ;;  %v171_v39 = vsub.f32 %v170_v31, %v166_v30  ;;  %v225_v61 = vcvt.s32.f32 %v223_v46  ;;  %vm94_vm2 = vcmp.eq.s32.totalorder %v624_v22, %v93_v50  ;;  %p501_p8 = por %p500_p7, %p499_p6 }
  0x3e   :  { %v187_v42 = vsub.f32 %v186_v34, %v185_v32  ;;  %v635_v43 = vmax.f32 %v72_v27, %v73_v36  ;;  %v134_v1 = vrot.slane %v640_v52, 1  ;;  %v654_v5 = vand.u32 127, %v88_v15 }
  0x3f   :  { %v172_v47 = vmax.f32 %v171_v39, 0.0  ;;  %v178_v48 = vrot.slane %v162_v38, 4  ;;  %vm239_vm4 = vcmp.ge.f32.partialorder %v613_v3, 0.0  ;;  %v124_v7 = vstv %s637_s5  ;;  %p502_p9 = pnand %p501_p8, %p495_p5 }
  0x40   :  { %v188_v51 = vmax.f32 %v187_v42, 0.0  ;;  %v75_v55 = vsub.f32 %v615_v4, %v635_v43  ;;  %v264_v9 = vmul.f32 0.5, %v224_v60  ;;  %v265_v10 = vmul.f32 0.5, %v225_v61 }
  0x41   :  { %v174_v53 = vrot.slane %v172_v47, 1  ;;  %v180_v54 = vadd.f32 %v178_v48, %v162_v38  ;;  %v395_v11 = vsel %vm94_vm2, 1.0, %v527_v0  ;;  %v136_v13 = vadd.f32 %v134_v1, %v640_v52 }
  0x42   :  { %v190_v57 = vrot.slane %v188_v51, 1  ;;  %v76_v59 = vmul.f32 1.442695, %v75_v55  ;;  %v137_v14 = vrot.slane %v640_v52, 2  ;;  %vm106_vm5 = vcmp.eq.s32.totalorder %v633_v37, 4 }
  0x43   :  { %v644_v58 = vmul.f32 %v174_v53, %v172_v47  ;;  %vm665_vm6 = vcmp.lt.s32.totalorder %v654_v5, %v124_v7  ;;  %v294_v18 = vadd.f32 %v225_v61, %v224_v60  ;;  %v244_v19 = vmax.f32 %v611_v2, 0.0 }
  0x44   :  { %v415_v40 = vpop.eup %414  ;;  %v646_v62 = vmul.f32 %v190_v57, %v188_v51  ;;  %v245_v20 = vmax.f32 %v613_v3, 0.0  ;;  %v252_v21 = vmul.f32 %v224_v60, %v611_v2  ;;  %vm109_vm7 = vcmask 122880  }
  0x45   :  { %v417_v44 = vpop.eup %416  ;;  %v234_v45 = vadd.f32 1.0, %v415_v40  ;;  %v650_v63 = vsub.f32 %v180_v54, %v644_v58  ;;  %v240_v12 = vsel %vm238_vm3, 1.0, %v415_v40  ;;  %v253_v25 = vmul.f32 %v225_v61, %v613_v3 }
  0x46   :  { %v235_v49 = vadd.f32 1.0, %v417_v44  ;;  %v419_v56 = vpop.eup %418  ;;  %v194_v6 = vadd.f32 1e-07, %v646_v62  ;;  %v241_v15 = vsel %vm239_vm4, 1.0, %v417_v44  ;;  %v266_v26 = vsub.f32 0.75, %v264_v9 }
  0x47   :  { %420 = vrcp.f32 %v234_v45  ;;  %400 = vpush %v419_v56  ;;  %v182_v8 = vadd.f32 1e-07, %v650_v63  ;;  %v97_v27 = vmul.f32 %v395_v11, %v615_v4  ;;  %v267_v30 = vsub.f32 0.75, %v265_v10 }
  0x48   :  { %422 = vrcp.f32 %v235_v49  ;;  %402 = vpush %v419_v56  ;;  %v139_v31 = vadd.f32 %v137_v14, %v136_v13  ;;  %v140_v32 = vrot.slane %v640_v52, 3  ;;  %v193_v2 = vsub.f32 %v646_v62, %v650_v63 }
  0x49   :  { %424 = vlog2.f32 %v234_v45  ;;  %v98_v44 = vsel %vm67_vm1, %v97_v27, 0.0  ;;  %v529_v53 = vmov 1.0   ;;  %v396_v7 = vsel %vm665_vm6, 1.0, %v527_v0 }
  0x4a   :  { %426 = vlog2.f32 %v235_v49  ;;  %v107_v54 = vsel %vm106_vm5, 0.1, %v529_v53  ;;  %v142_v55 = vadd.f32 %v140_v32, %v139_v31  ;;  %v99_v63 = vrot.slane %v98_v44, 4 }
  0x4b   :  { %428 = vpow2.f32 %v76_v59  ;;  %v114_v9 = vsel %vm109_vm7, %v107_v54, 0.0  ;;  %vm145_vm8 = vcmask 1040384   ;;  %vm207_vm10 = vcmp.eq.s32.totalorder %v654_v5, 0 }
  0x4c   :  { %430 = vrcp.f32 %v194_v6  ;;  %v144_v11 = vmul.f32 %v396_v7, %v142_v55  ;;  %vm209_vm11 = vcmp.eq.s32.totalorder %v654_v5, 1  ;;  %vm211_vm12 = vcmp.eq.s32.totalorder %v654_v5, 2 }
  0x4d   :  { %432 = vrcp.f32 %v182_v8  ;;  %vm213_vm13 = vcmp.eq.s32.totalorder %v654_v5, 5  ;;  %vm352_vm14 = vcmp.eq.s32.totalorder %v654_v5, 3  ;;  %vm360_vm15 = vcmp.eq.s32.totalorder %v654_v5, 4 }
  0x51   :  { %v421_v17 = vpop.eup %420 }
  0x52   :  { %v423_v23 = vpop.eup %422  ;;  %v242_v24 = vmul.f32 %v421_v17, %v240_v12  ;;  %v100_v17 = vadd.f32 %v99_v63, %v98_v44 }
  0x53   :  { %v425_v28 = vpop.eup %424  ;;  %v243_v29 = vmul.f32 %v423_v23, %v241_v15 }
  0x54   :  { %v427_v33 = vpop.eup %426  ;;  %v256_v34 = vmul.f32 %v242_v24, %v224_v60  ;;  %v247_v35 = vmul.f32 0.6931472, %v425_v28  ;;  %v258_v36 = vadd.f32 %v242_v24, %v224_v60  ;;  %v101_v23 = vrot.slane %v100_v17, 2 }
  0x55   :  { %v429_v38 = vpop.eup %428  ;;  %v288_v39 = vadd.f32 %v243_v29, %v242_v24  ;;  %v257_v40 = vmul.f32 %v243_v29, %v225_v61  ;;  %v249_v3 = vmul.f32 0.6931472, %v427_v33  ;;  %v259_v41 = vadd.f32 %v243_v29, %v225_v61 }
  0x56   :  { %v260_v42 = vmul.f32 2.0, %v256_v34  ;;  %v250_v4 = vadd.f32 %v247_v35, %v244_v19  ;;  %v78_v45 = vsel %vm67_vm1, %v429_v38, 0.0  ;;  %v431_v50 = vpop.eup %430  ;;  %v287_v35 = vld [vmem:[#allocation5] sm:$0xff] }
  0x57   :  { %289 = vadd.xlane.f32.xlu0 %v288_v39  ;;  %v261_v46 = vmul.f32 2.0, %v257_v40  ;;  %v282_v47 = vadd.f32 %v257_v40, %v256_v34  ;;  %v251_v48 = vadd.f32 %v249_v3, %v245_v20  ;;  %v79_v49 = vrot.slane %v78_v45, 4  ;;  %v433_v56 = vpop.eup %432  ;;  %v293_v39 = vld [vmem:[#allocation6] sm:$0xff] }
  0x58   :  { %v254_v51 = vsub.f32 %v250_v4, %v252_v21  ;;  %v262_v52 = vsub.f32 %v258_v36, %v260_v42  ;;  %v196_v60 = vmul.f32 %v431_v50, %v193_v2  ;;  %v184_v1 = vmul.f32 %v433_v56, %v644_v58  ;;  %v281_v2 = vld [vmem:[#allocation4] sm:$0xff] }
  0x59   :  { %283 = vadd.xlane.f32.xlu1 %v282_v47  ;;  %v255_v57 = vsub.f32 %v251_v48, %v253_v25  ;;  %v263_v59 = vsub.f32 %v259_v41, %v261_v46  ;;  %v80_v61 = vadd.f32 %v79_v49, %v78_v45  ;;  %v146_v20 = vsel %vm145_vm8, %v144_v11, 0.0 }
  0x5a   :  { %v268_v62 = vmul.f32 %v266_v26, %v254_v51  ;;  %v197_v10 = vsub.f32 %v184_v1, %v196_v60  ;;  %v102_v25 = vadd.f32 %v101_v23, %v100_v17  ;;  %v530_v34 = vmov 0  }
  0x5b   :  { %295 = vadd.xlane.f32.xlu0 %v294_v18  ;;  %v269_v6 = vmul.f32 %v267_v30, %v255_v57  ;;  %v81_v8 = vrot.slane %v80_v61, 2  ;;  %413 = vset.pattern.permute.xlu1 %v530_v34  ;;  %v312_v45 = vstv %s398_s2 }
  0x5c   :  { %v270_v37 = vmul.f32 %v268_v62, %v262_v52  ;;  %v199_v15 = vsub.f32 1.0, %v197_v10  ;;  %v103_v26 = vrot.slane %v102_v25, 1  ;;  %412 = vset.pattern.permute.xlu0 %v530_v34  ;;  %vm313_vm9 = vcmp.lt.s32.totalorder %v624_v22, %v312_v45 }
  0x5d   :  { %v271_v12 = vmul.f32 %v269_v6, %v263_v59  ;;  %v82_v13 = vadd.f32 %v81_v8, %v80_v61 }
  0x5e   :  { %v272_v14 = vmul.f32 %v270_v37, %v262_v52  ;;  %v200_v18 = vmul.f32 %v396_v7, %v199_v15  ;;  %v104_v29 = vadd.f32 %v103_v26, %v102_v25  ;;  %v399_v52 = vsel %vm313_vm9, 1.0, %v527_v0 }
  0x5f   :  { %v273_v19 = vmul.f32 %v271_v12, %v263_v59  ;;  %115 = vadd.xlane.f32.xlu0 %v114_v9  ;;  %v83_v58 = vrot.slane %v82_v13, 1 }
  0x60   :  { %v201_v24 = vsel %vm145_vm8, %v200_v18, 0.0 }
  0x61   :  { %v275_v21 = vadd.f32 %v273_v19, %v272_v14  ;;  %v84_v16 = vadd.f32 %v83_v58, %v82_v13 }
  0x63   :  { %276 = vadd.xlane.f32.xlu1 %v275_v21  ;;  %147 = vadd.xlane.f32.xlu0 %v146_v20  ;;  %434 = vlog2.f32 %v84_v16 }
  0x67   :  { %202 = vadd.xlane.f32.xlu1 %v201_v24 }
  0x6d   :  { %v435_v27 = vpop.eup %434 }
  0x6e   :  { %v86_v28 = vmul.f32 0.6931472, %v435_v27 }
  0x70   :  { %v87_v30 = vadd.f32 %v86_v28, %v635_v43  ;;  %v274_v43 = vld [vmem:[#allocation3] sm:$0xff] }
  0x72   :  { %v105_v31 = vsub.f32 %v87_v30, %v104_v29 }
  0x74   :  { %v108_v32 = vmul.f32 %v107_v54, %v105_v31 }
  0x76   :  { %v110_v33 = vsel %vm109_vm7, %v108_v32, 0.0 }
  0x77   :  { %111 = vadd.xlane.f32.xlu1 %v110_v33 }
  0x78   :  { %s401_s13 = spop %400 }
  0x79   :  { %s143_s14 = smul.f32 5.0, %s401_s13  ;;  %s695_s0 = spop %402 }
  0x7a   :  { %s198_s15 = smul.f32 2.0, %s401_s13  ;;  %v348_v31 = vstv %s695_s0 }
  0x7b   :  { %v150_v62 = vstv %s143_s14  ;;  %s326_s16 = smul.f32 0.00390625, %s695_s0 }
  0x7c   :  { %v205_v7 = vstv %s198_s15 }
  0x7d   :  { %v327_v15 = vstv %s326_s16 }
  0xe4   :  { %v290_v36 = vpop.xlane.xlu0 %289 }
  0xe5   :  { %v291_v38 = vadd.f32 %v290_v36, %v287_v35 }
  0xe6   :  { %v284_v40 = vpop.xlane.xlu1 %283 }
  0xe7   :  { %292 = vst.msk [vmem:[#allocation5] sm:$0xff] %vm54_vm0, %v291_v38  ;;  %v285_v3 = vadd.f32 %v284_v40, %v281_v2 }
  0xe8   :  { %v296_v41 = vpop.xlane.xlu0 %295 }
  0xe9   :  { %v297_v42 = vadd.f32 %v296_v41, %v293_v39  ;;  %286 = vst.msk [vmem:[#allocation4] sm:$0xff] %vm54_vm0, %v285_v3 }
  0xeb   :  { %298 = vst.msk [vmem:[#allocation6] sm:$0xff] %vm54_vm0, %v297_v42 }
  0xec   :  { %v116_v50 = vpop.xlane.xlu0 %115 }
  0xee   :  { %v332_v46 = vld [vmem:[#allocation5] sm:$0xff] }
  0xf0   :  { %v277_v4 = vpop.xlane.xlu1 %276  ;;  %v329_v51 = vld [vmem:[#allocation4] sm:$0xff]  ;;  %v148_v61 = vpop.xlane.xlu0 %147 }
  0xf1   :  { %v278_v44 = vadd.f32 %v277_v4, %v274_v43  ;;  %v330_v54 = vmul.f32 2.0, %v329_v51  ;;  %v151_v8 = vmul.f32 %v150_v62, %v148_v61 }
  0xf2   :  { %v333_v47 = vld [vmem:[#allocation6] sm:$0xff] }
  0xf3   :  { %280 = vst.msk [vmem:[#allocation3] sm:$0xff] %vm54_vm0, %v278_v44  ;;  %v334_v48 = vadd.f32 %v333_v47, %v332_v46  ;;  %v331_v59 = vadd.f32 1.0, %v330_v54 }
  0xf4   :  { %v203_v60 = vpop.xlane.xlu1 %202 }
  0xf5   :  { %v335_v49 = vadd.f32 1.0, %v334_v48  ;;  %v206_v11 = vmul.f32 %v205_v7, %v203_v60 }
  0xf7   :  { %436 = vrcp.f32 %v335_v49 }
  0xf8   :  { %438 = vrcp.f32 %v116_v50 }
  0xfa   :  { %v316_v53 = vld [vmem:[#allocation3] sm:$0xff] }
  0xfb   :  { %v317_v55 = vmul.f32 %v399_v52, %v316_v53 }
  0xfd   :  { %v319_v56 = vsel %vm54_vm0, %v317_v55, 0.0 }
  0xfe   :  { %v320_v57 = vrot.slane %v319_v56, 4 }
 0x100   :  { %v321_v22 = vadd.f32 %v320_v57, %v319_v56 }
 0x101   :  { %v437_v63 = vpop.eup %436 }
 0x102   :  { %v439_v0 = vpop.eup %438  ;;  %v322_v1 = vrot.slane %v321_v22, 2  ;;  %v337_v6 = vmul.f32 %v437_v63, %v331_v59 }
 0x104   :  { %v323_v37 = vadd.f32 %v322_v1, %v321_v22  ;;  %v338_v9 = vsub.f32 1.0, %v337_v6  ;;  %v112_v10 = vpop.xlane.xlu1 %111 }
 0x105   :  { %v119_v12 = vmul.f32 %v439_v0, %v112_v10 }
 0x106   :  { %v324_v13 = vrot.slane %v323_v37, 1  ;;  %v339_v14 = vmul.f32 %v399_v52, %v338_v9 }
 0x107   :  { %v208_v17 = vsel %vm207_vm10, %v119_v12, 0.0  ;;  %v214_v19 = vadd.f32 %v151_v8, %v119_v12 }
 0x108   :  { %v325_v58 = vadd.f32 %v324_v13, %v323_v37  ;;  %v341_v18 = vsel %vm54_vm0, %v339_v14, 0.0  ;;  %v210_v20 = vsel %vm209_vm11, %v151_v8, %v208_v17 }
 0x109   :  { %v342_v21 = vrot.slane %v341_v18, 4  ;;  %v212_v16 = vsel %vm211_vm12, %v206_v11, %v210_v20  ;;  %v215_v23 = vadd.f32 %v214_v19, %v206_v11 }
 0x10a   :  { %v328_v24 = vmul.f32 %v327_v15, %v325_v58 }
 0x10b   :  { %v343_v25 = vadd.f32 %v342_v21, %v341_v18  ;;  %v216_v26 = vsel %vm213_vm13, %v215_v23, %v212_v16 }
 0x10c   :  { %355 = vperm.xlu0 %412, %v328_v24   ;;  %217 = vst [vmem:[#allocation2] sm:$0x1] %v216_v26 }
 0x10d   :  { %v344_v27 = vrot.slane %v343_v25, 2 }
 0x10f   :  { %v345_v28 = vadd.f32 %v344_v27, %v343_v25 }
 0x111   :  { %v346_v29 = vrot.slane %v345_v28, 1 }
 0x113   :  { %v347_v30 = vadd.f32 %v346_v29, %v345_v28  ;;  %v302_v2 = vld [vmem:[#allocation2] sm:$0x1] }
 0x115   :  { %v349_v32 = vmul.f32 %v348_v31, %v347_v30 }
 0x117   :  { %363 = vperm.xlu1 %413, %v349_v32   ;;  %v369_v33 = vadd.f32 %v349_v32, %v328_v24 }
 0x11b   :  { %372 = vperm.xlu1 %413, %v369_v33  }
 0x18b   :  { %v356_v34 = vpop.permute.xlu0 %355 }
 0x18c   :  { %v358_v35 = vsel %vm352_vm14, %v356_v34, 0.0 }
 0x18d   :  { %v359_v39 = vadd.f32 %v358_v35, %v302_v2 }
 0x196   :  { %v364_v36 = vpop.permute.xlu1 %363 }
 0x197   :  { %v366_v38 = vsel %vm360_vm15, %v364_v36, 0.0 }
 0x198   :  { %v367_v40 = vadd.f32 %v366_v38, %v359_v39 }
 0x19a   :  { %v373_v3 = vpop.permute.xlu1 %372 }
 0x19b   :  { %v375_v41 = vsel %vm213_vm13, %v373_v3, 0.0 }
 0x19c   :  { %v376_v42 = vadd.f32 %v375_v41, %v367_v40 }
 0x19e   :  { %377 = vst [vmem:[#allocation14] sm:$0x1] %v376_v42 }
 0x19f   :  { %505 = shalt.err (!%p502_p9)
}
 0x1a0   :  { %s506_s23 = scalar_lea.hbm %s728_s6, 16 }
 0x1a1   :  { %p507_p10 = scmp.ne.s32.totalorder %s728_s6, %s506_s23  ;;  %p510_p11 = scmp.lt.u32.totalorder %s506_s23, %s728_s6 }
 0x1a3   :  { %p512_p12 = pnand %p510_p11, %p507_p10 }
 0x1a5   :  { %515 = shalt.err (!%p512_p12)
}
 0x1a6   :  { %387 = dma.vmem_to_hbm [thread:$0]  %s385_s18, 16, %s728_s6, [#allocation11]  }
 0x1a7   :  { %522 = dma.done.wait [#allocation11], 16  }
 0x1a8   :  { %523 = vsyncadd [#allocation11], 4294967280 }
 0x1a9   :  { %391 = vsyncpa [#allocation10], 1 }
 0x1aa   :  { %392 = vsyncpa [#allocation13], 1 }
 0x1ab   :  { %393 = vsyncpa [#allocation11], 1 }

</bundles_post_ra>
